<compile_context>
chip_gen: v7x
topology: tpu7x:2x2x1
jax: 0.10.0
libtpu: 0.0.40
codegen_flags: <defaults>
</compile_context>

<pallas_src>
import jax
import jax.numpy as jnp
from jax.experimental import pallas as pl
from jax.experimental.pallas import tpu as pltpu

# bf16 for the HBM-resident v stream (accumulators / softmax stay f32).
STREAM_DTYPE = jnp.bfloat16


def _pick_tile(total, cap, multiple):
    """Largest divisor of `total` that is <= cap and a multiple of `multiple`.

    Falls back to `total` (full extent — always a legal block) if none exists.
    """
    best = 0
    for d in range(1, total + 1):
        if total % d == 0 and d <= cap and d % multiple == 0:
            best = d
    return best if best > 0 else total


# ----------------------------------------------------------------------------
# Kernel 1: fused 1x1 qkv conv + depthwise 3x3 conv + Gram / norm accumulation
# ----------------------------------------------------------------------------
def _fused_qkv_dwconv_gram_kernel(xc_ref, xp_ref, xn_ref, qkvw_ref, qkvb_ref,
                                  dww_ref, dwb_ref,
                                  v_ref, g_ref, sq_ref, sk_ref):
    h = pl.program_id(1)
    nh = pl.num_programs(1)
    _, TH, W, NC = xc_ref.shape
    C3 = qkvw_ref.shape[1]

    @pl.when(h == 0)
    def _():
        g_ref[...] = jnp.zeros_like(g_ref)
        sq_ref[...] = jnp.zeros_like(sq_ref)
        sk_ref[...] = jnp.zeros_like(sk_ref)

    # Row tile + 1-row halo from the (index-clamped) neighbour rows, bf16.
    xc = xc_ref[0].astype(jnp.bfloat16)                       # (TH, W, NC)
    top = xp_ref[0, 0].astype(jnp.bfloat16)[None]             # (1, W, NC)
    bot = xn_ref[0, 0].astype(jnp.bfloat16)[None]             # (1, W, NC)
    x_ext = jnp.concatenate([top, xc, bot], axis=0)           # (TH+2, W, NC)

    # 1x1 conv: bf16 x bf16 on the MXU, f32 accumulate, f32 bias add.
    x2d = x_ext.reshape((TH + 2) * W, NC)
    qkv = jnp.dot(x2d, qkvw_ref[...].astype(jnp.bfloat16),
                  preferred_element_type=jnp.float32)
    qkv = qkv + qkvb_ref[...].astype(jnp.float32)
    qkv = qkv.reshape(TH + 2, W, C3)

    # dwconv zero-padding acts on the 1x1-conv *output*: halo rows that fall
    # outside the image must be exactly zero (not just bias).
    top_row = (qkv[0] * (h > 0).astype(jnp.float32))[None]
    bot_row = (qkv[TH + 1] * (h < nh - 1).astype(jnp.float32))[None]
    qkv = jnp.concatenate([top_row, qkv[1:TH + 1], bot_row], axis=0)

    # W-direction shifts with zero edge columns (built once; the 9-tap loop
    # below only slices along the leading row axis).
    zcol = jnp.zeros((TH + 2, 1, C3), jnp.float32)
    q_left = jnp.concatenate([zcol, qkv[:, :W - 1, :]], axis=1)   # col w -> qkv[w-1]
    q_right = jnp.concatenate([qkv[:, 1:, :], zcol], axis=1)      # col w -> qkv[w+1]
    taps = (q_left, qkv, q_right)

    # Depthwise 3x3 (cross-correlation, PyTorch semantics) + bias, f32 VPU.
    dww = dww_ref[...].astype(jnp.float32)                    # (3, 3, C3)
    acc = jnp.zeros((TH, W, C3), jnp.float32)
    for dh in range(3):
        for dw in range(3):
            acc = acc + taps[dw][dh:dh + TH] * dww[dh, dw]
    acc = acc + dwb_ref[...].astype(jnp.float32)

    q = acc[:, :, 0 * NC:1 * NC]
    k = acc[:, :, 1 * NC:2 * NC]
    v = acc[:, :, 2 * NC:3 * NC]

    # Only v is streamed back to HBM (bf16); q/k are consumed on the spot.
    v_ref[0] = v.astype(v_ref.dtype)

    # Gram matrix q^T k (contracted over the pixel axis) + squared norms.
    q2d = q.reshape(TH * W, NC)
    k2d = k.reshape(TH * W, NC)
    g_ref[0] += jax.lax.dot_general(
        q2d.astype(jnp.bfloat16), k2d.astype(jnp.bfloat16),
        (((0,), (0,)), ((), ())), preferred_element_type=jnp.float32)
    sq_ref[0] += jnp.sum(q2d * q2d, axis=0, keepdims=True)
    sk_ref[0] += jnp.sum(k2d * k2d, axis=0, keepdims=True)


def fused_qkv_dwconv_gram(x_cl, qkv_w, qkv_b, dw_w, dw_b,
                          out_dtype=STREAM_DTYPE):
    """x_cl: (B, H, W, NC) channels-last.

    Returns:
      v    (B, H, W, NC)  bf16
      gram (B, NC, NC)    f32   -- sum_p q[p,i] * k[p,j]
      sq   (B, 1, NC)     f32   -- sum_p q[p,i]^2
      sk   (B, 1, NC)     f32   -- sum_p k[p,i]^2
    """
    B, H, W, NC = x_cl.shape
    C3 = qkv_w.shape[1]

    # Pixel budget per tile, scaled by channel count (f32 intermediates are
    # ~4x the qkv tile); conservative enough for v7x's 64 MiB VMEM.
    pix_cap = max(256, (4 * 1024 * 1024) // (48 * max(NC, 1)))
    TH = _pick_tile(H, max(1, pix_cap // max(W, 1)), 1)
    nH = H // TH

    cur = pl.BlockSpec((1, TH, W, NC), lambda b, h: (b, h, 0, 0))
    prev = pl.BlockSpec((1, 1, W, NC),
                        lambda b, h: (b, jnp.maximum(h * TH - 1, 0), 0, 0))
    nxt = pl.BlockSpec((1, 1, W, NC),
                       lambda b, h: (b, jnp.minimum(h * TH + TH, H - 1), 0, 0))
    w_spec = pl.BlockSpec((NC, C3), lambda b, h: (0, 0))
    b_spec = pl.BlockSpec((1, C3), lambda b, h: (0, 0))
    dww_spec = pl.BlockSpec((3, 3, C3), lambda b, h: (0, 0, 0))

    v_spec = pl.BlockSpec((1, TH, W, NC), lambda b, h: (b, h, 0, 0))
    g_spec = pl.BlockSpec((1, NC, NC), lambda b, h: (b, 0, 0))
    s_spec = pl.BlockSpec((1, 1, NC), lambda b, h: (b, 0, 0))

    return pl.pallas_call(
        _fused_qkv_dwconv_gram_kernel,
        out_shape=(jax.ShapeDtypeStruct((B, H, W, NC), out_dtype),
                   jax.ShapeDtypeStruct((B, NC, NC), jnp.float32),
                   jax.ShapeDtypeStruct((B, 1, NC), jnp.float32),
                   jax.ShapeDtypeStruct((B, 1, NC), jnp.float32)),
        grid=(B, nH),
        in_specs=[cur, prev, nxt, w_spec, b_spec, dww_spec, b_spec],
        out_specs=(v_spec, g_spec, s_spec, s_spec),
        compiler_params=pltpu.CompilerParams(
            dimension_semantics=("parallel", "arbitrary")),
    )(x_cl, x_cl, x_cl, qkv_w, qkv_b.reshape(1, C3), dw_w, dw_b.reshape(1, C3))


# ----------------------------------------------------------------------------
# Kernel 2: fused attn@v + project_out (1x1) + residual, channel-major output
# ----------------------------------------------------------------------------
def _attn_proj_residual_kernel(v_ref, x_ref, m_ref, b_ref, o_ref):
    v = v_ref[0]                                              # (TP, NC) bf16
    m = m_ref[0]                                              # (NC_out, NC_in) bf16
    # out[o, p] = sum_i m[o, i] * v[p, i]  -> (NC, TP), lane-dense pixel axis.
    out = jax.lax.dot_general(
        m, v, (((1,), (1,)), ((), ())), preferred_element_type=jnp.float32)
    o_ref[0] = (out + b_ref[...] + x_ref[0]).astype(o_ref.dtype)


def lam_apply_attn_proj_residual(v_cl, x_cm, m_t, proj_b):
    """v_cl (B,P,NC) bf16, x_cm (B,NC,P) f32, m_t (B,NC,NC) bf16 -> (B,NC,P) f32."""
    B, P, NC = v_cl.shape
    TP = _pick_tile(P, 4096, 128)
    nP = P // TP
    v_spec = pl.BlockSpec((1, TP, NC), lambda b, p: (b, p, 0))
    x_spec = pl.BlockSpec((1, NC, TP), lambda b, p: (b, 0, p))
    m_spec = pl.BlockSpec((1, NC, NC), lambda b, p: (b, 0, 0))
    b_spec = pl.BlockSpec((NC, 1), lambda b, p: (0, 0))
    o_spec = pl.BlockSpec((1, NC, TP), lambda b, p: (b, 0, p))
    return pl.pallas_call(
        _attn_proj_residual_kernel,
        out_shape=jax.ShapeDtypeStruct((B, NC, P), jnp.float32),
        grid=(B, nP),
        in_specs=[v_spec, x_spec, m_spec, b_spec],
        out_specs=o_spec,
        compiler_params=pltpu.CompilerParams(
            dimension_semantics=("parallel", "parallel")),
    )(v_cl, x_cm, m_t, proj_b.reshape(NC, 1))


# ----------------------------------------------------------------------------
# Full forward (tiny O(B*N^2*C) glue in plain JAX, hot paths in Pallas)
# ----------------------------------------------------------------------------
def lam_module_v2_forward(x, params):
    """x: (B, N, C, H, W) -> out: (B, N*C, H, W)  (same as the PyTorch module)."""
    B, N, C, H, W = x.shape
    NC = N * C
    P = H * W
    eps = 1e-12  # torch.nn.functional.normalize default

    # NCHW -> channels-last once:  x_cl[b,h,w,n*C+c] == x_input[b, n*C+c, h, w].
    x_cl = jnp.transpose(x, (0, 3, 4, 1, 2)).reshape(B, H, W, NC)

    # Fused qkv conv + dwconv + Gram/norm accumulation; only v hits HBM.
    v_cl, gram, sq, sk = fused_qkv_dwconv_gram(
        x_cl, params["qkv_w"], params["qkv_b"], params["dw_w"], params["dw_b"])
    v_cl = v_cl.reshape(B, P, NC)

    # Tiny finalization (plain JAX): per-layer-pair dot products are the
    # block-diagonal contraction of the Gram matrix; then L2-normalize,
    # temperature, softmax.
    gram4 = gram.reshape(B, N, C, N, C)
    eye_c = jnp.eye(C, dtype=gram.dtype)
    scores = jnp.einsum("bicjd,cd->bij", gram4, eye_c)        # (B, N, N)
    q_norm = jnp.sqrt(sq.reshape(B, N, C).sum(axis=-1))       # (B, N)
    k_norm = jnp.sqrt(sk.reshape(B, N, C).sum(axis=-1))
    denom = (jnp.maximum(q_norm, eps)[:, :, None] *
             jnp.maximum(k_norm, eps)[:, None, :])
    attn = jax.nn.softmax(scores / denom * params["temperature"], axis=-1)

    # Fold (attn @ .) and project_out into one per-batch (NC_out, NC_in) matrix:
    #   out[o, p] = sum_{m,c} m_t[o, m*C+c] * v[p, m*C+c]
    #   m_t[o, m*C+c] = sum_n attn[n, m] * proj_w[n*C+c, o]
    proj_w4 = params["proj_w"].reshape(N, C, NC)
    m_t = jnp.einsum("bnm,nco->bomc", attn, proj_w4).reshape(B, NC, NC)
    m_t = m_t.astype(jnp.bfloat16)

    # Residual read straight from the NCHW input; output stays channel-major.
    x_cm = x.reshape(B, NC, P).astype(jnp.float32)
    out_cm = lam_apply_attn_proj_residual(v_cl, x_cm, m_t, params["proj_b"])
    return out_cm.reshape(B, NC, H, W)


def init_params(key, in_dim):
    """in_dim == N*C of the module. Deterministic synthetic init.

    Layout mapping vs PyTorch:
      qkv_w[i, o]    == Conv2d(qkv).weight[o, i, 0, 0]
      dw_w[dh,dw,ch] == Conv2d(qkv_dwconv).weight[ch, 0, dh, dw]
      proj_w[i, o]   == Conv2d(project_out).weight[o, i, 0, 0]
    """
    k1, k2, k3, k4, k5, k6 = jax.random.split(key, 6)
    scale = 0.1
    return {
        "qkv_w": scale * jax.random.normal(k1, (in_dim, 3 * in_dim), jnp.float32),
        "qkv_b": scale * jax.random.normal(k2, (3 * in_dim,), jnp.float32),
        "dw_w": scale * jax.random.normal(k3, (3, 3, 3 * in_dim), jnp.float32),
        "dw_b": scale * jax.random.normal(k4, (3 * in_dim,), jnp.float32),
        "proj_w": scale * jax.random.normal(k5, (in_dim, in_dim), jnp.float32),
        "proj_b": scale * jax.random.normal(k6, (in_dim,), jnp.float32),
        "temperature": jnp.ones((1,), jnp.float32),
    }


# ----------------------------------------------------------------------------
# Plain-JAX reference (mirrors the PyTorch module) for a correctness check.
# ----------------------------------------------------------------------------
def _reference_forward(x, params):
    B, N, C, H, W = x.shape
    NC = N * C
    x_in = x.reshape(B, NC, H, W)
    qkv = (jnp.einsum("bchw,cd->bdhw", x_in, params["qkv_w"])
           + params["qkv_b"][None, :, None, None])
    w_dw = jnp.transpose(params["dw_w"], (2, 0, 1))[:, None, :, :]   # (3NC,1,3,3)
    qkv = jax.lax.conv_general_dilated(
        qkv, w_dw, window_strides=(1, 1), padding=((1, 1), (1, 1)),
        dimension_numbers=("NCHW", "OIHW", "NCHW"),
        feature_group_count=3 * NC) + params["dw_b"][None, :, None, None]
    q, k, v = jnp.split(qkv, 3, axis=1)
    D = C * H * W
    q = q.reshape(B, N, D)
    k = k.reshape(B, N, D)
    v = v.reshape(B, N, D)
    qn = q / jnp.maximum(jnp.linalg.norm(q, axis=-1, keepdims=True), 1e-12)
    kn = k / jnp.maximum(jnp.linalg.norm(k, axis=-1, keepdims=True), 1e-12)
    attn = jax.nn.softmax(
        jnp.einsum("bnd,bmd->bnm", qn, kn) * params["temperature"], axis=-1)
    out1 = jnp.einsum("bnm,bmd->bnd", attn, v).reshape(B, NC, H, W)
    proj = (jnp.einsum("bchw,cd->bdhw", out1, params["proj_w"])
            + params["proj_b"][None, :, None, None])
    return proj + x_in


if __name__ == "__main__":
    B, N, C, H, W = 2, 4, 4, 8, 8            # in_dim = N*C = 16
    key = jax.random.PRNGKey(0)
    kx, kp = jax.random.split(key)
    x = jax.random.normal(kx, (B, N, C, H, W), jnp.float32)
    params = init_params(kp, N * C)

    out = jax.jit(lam_module_v2_forward)(x, params)
    out = jax.block_until_ready(out)
    assert out.shape == (B, N * C, H, W), out.shape
    assert bool(jnp.all(jnp.isfinite(out)))

    ref = _reference_forward(x, params)
    err = float(jnp.max(jnp.abs(out - ref)))
    scale = float(jnp.max(jnp.abs(ref))) + 1e-6
    assert err <= 3e-2 * max(1.0, scale), ("mismatch vs reference", err, scale)
    print("KERNEL_OK")
</pallas_src>

<mosaic_0001>
module attributes {stable_mosaic.version = 11 : i64} {
  func.func @_fused_qkv_dwconv_gram_kernel(%arg0: i32, %arg1: i32, %arg2: memref<1x8x8x16xf32, #tpu.memory_space<vmem>>, %arg3: memref<1x1x8x16xf32, #tpu.memory_space<vmem>>, %arg4: memref<1x1x8x16xf32, #tpu.memory_space<vmem>>, %arg5: memref<16x48xf32, #tpu.memory_space<vmem>>, %arg6: memref<1x48xf32, #tpu.memory_space<vmem>>, %arg7: memref<3x3x48xf32, #tpu.memory_space<vmem>>, %arg8: memref<1x48xf32, #tpu.memory_space<vmem>>, %arg9: memref<1x8x8x16xbf16, #tpu.memory_space<vmem>>, %arg10: memref<1x16x16xf32, #tpu.memory_space<vmem>>, %arg11: memref<1x1x16xf32, #tpu.memory_space<vmem>>, %arg12: memref<1x1x16xf32, #tpu.memory_space<vmem>>) attributes {dimension_semantics = [#tpu.dimension_semantics<parallel>, #tpu.dimension_semantics<arbitrary>], iteration_bounds = array<i64: 2, 1>, scalar_prefetch = 0 : i64, scratch_operands = 0 : i64, tpu.core_type = #tpu.core_type<tc>, window_params = [{transform_indices = @transform_0, window_bounds = array<i64: 1, 8, 8, 16>}, {transform_indices = @transform_1, window_bounds = array<i64: 1, 1, 8, 16>}, {transform_indices = @transform_2, window_bounds = array<i64: 1, 1, 8, 16>}, {pipeline_mode = #tpu.pipeline_mode<synchronous>, transform_indices = @transform_3, window_bounds = array<i64: 16, 48>}, {pipeline_mode = #tpu.pipeline_mode<synchronous>, transform_indices = @transform_4, window_bounds = array<i64: 1, 48>}, {pipeline_mode = #tpu.pipeline_mode<synchronous>, transform_indices = @transform_5, window_bounds = array<i64: 3, 3, 48>}, {pipeline_mode = #tpu.pipeline_mode<synchronous>, transform_indices = @transform_6, window_bounds = array<i64: 1, 48>}, {transform_indices = @transform_7, window_bounds = array<i64: 1, 8, 8, 16>}, {transform_indices = @transform_8, window_bounds = array<i64: 1, 16, 16>}, {transform_indices = @transform_9, window_bounds = array<i64: 1, 1, 16>}, {transform_indices = @transform_10, window_bounds = array<i64: 1, 1, 16>}]} {
    %c0_i32 = arith.constant 0 : i32
    %0 = arith.cmpi eq, %arg1, %c0_i32 : i32
    %1 = arith.extui %0 : i1 to i32
    %c0_i32_0 = arith.constant 0 : i32
    %2 = arith.cmpi ne, %1, %c0_i32_0 : i32
    scf.if %2 {
      %cst_50 = arith.constant 0.000000e+00 : f32
      %151 = vector.broadcast %cst_50 : f32 to vector<1x16x16xf32>
      %c0_51 = arith.constant 0 : index
      %c0_52 = arith.constant 0 : index
      %c0_53 = arith.constant 0 : index
      %152 = vector.load %arg10[%c0_51, %c0_52, %c0_53] : memref<1x16x16xf32, #tpu.memory_space<vmem>>, vector<1x16x16xf32>
      tpu.vector_store %arg10[%c0_51, %c0_52, %c0_53], %151 {strides = array<i32>} : memref<1x16x16xf32, #tpu.memory_space<vmem>>, vector<1x16x16xf32>,
      %cst_54 = arith.constant 0.000000e+00 : f32
      %153 = vector.broadcast %cst_54 : f32 to vector<1x1x16xf32>
      %c0_55 = arith.constant 0 : index
      %c0_56 = arith.constant 0 : index
      %c0_57 = arith.constant 0 : index
      %154 = vector.load %arg11[%c0_55, %c0_56, %c0_57] : memref<1x1x16xf32, #tpu.memory_space<vmem>>, vector<1x1x16xf32>
      tpu.vector_store %arg11[%c0_55, %c0_56, %c0_57], %153 {strides = array<i32>} : memref<1x1x16xf32, #tpu.memory_space<vmem>>, vector<1x1x16xf32>,
      %cst_58 = arith.constant 0.000000e+00 : f32
      %155 = vector.broadcast %cst_58 : f32 to vector<1x1x16xf32>
      %c0_59 = arith.constant 0 : index
      %c0_60 = arith.constant 0 : index
      %c0_61 = arith.constant 0 : index
      %156 = vector.load %arg12[%c0_59, %c0_60, %c0_61] : memref<1x1x16xf32, #tpu.memory_space<vmem>>, vector<1x1x16xf32>
      tpu.vector_store %arg12[%c0_59, %c0_60, %c0_61], %155 {strides = array<i32>} : memref<1x1x16xf32, #tpu.memory_space<vmem>>, vector<1x1x16xf32>,
    } else {
    }
    %c0 = arith.constant 0 : index
    %c0_1 = arith.constant 0 : index
    %c0_2 = arith.constant 0 : index
    %c0_3 = arith.constant 0 : index
    %3 = vector.load %arg2[%c0, %c0_1, %c0_2, %c0_3] : memref<1x8x8x16xf32, #tpu.memory_space<vmem>>, vector<1x8x8x16xf32>
    %4 = vector.shape_cast %3 : vector<1x8x8x16xf32> to vector<8x8x16xf32>
    %5 = arith.truncf %4 : vector<8x8x16xf32> to vector<8x8x16xbf16>
    %c0_4 = arith.constant 0 : index
    %c0_5 = arith.constant 0 : index
    %c0_6 = arith.constant 0 : index
    %c0_7 = arith.constant 0 : index
    %6 = vector.load %arg3[%c0_4, %c0_5, %c0_6, %c0_7] : memref<1x1x8x16xf32, #tpu.memory_space<vmem>>, vector<1x1x8x16xf32>
    %7 = vector.shape_cast %6 : vector<1x1x8x16xf32> to vector<8x16xf32>
    %8 = arith.truncf %7 : vector<8x16xf32> to vector<8x16xbf16>
    %9 = vector.shape_cast %8 : vector<8x16xbf16> to vector<1x8x16xbf16>
    %c0_8 = arith.constant 0 : index
    %c0_9 = arith.constant 0 : index
    %c0_10 = arith.constant 0 : index
    %c0_11 = arith.constant 0 : index
    %10 = vector.load %arg4[%c0_8, %c0_9, %c0_10, %c0_11] : memref<1x1x8x16xf32, #tpu.memory_space<vmem>>, vector<1x1x8x16xf32>
    %11 = vector.shape_cast %10 : vector<1x1x8x16xf32> to vector<8x16xf32>
    %12 = arith.truncf %11 : vector<8x16xf32> to vector<8x16xbf16>
    %13 = vector.shape_cast %12 : vector<8x16xbf16> to vector<1x8x16xbf16>
    %14 = tpu.concatenate %9, %5, %13 in 0 : vector<1x8x16xbf16>, vector<8x8x16xbf16>, vector<1x8x16xbf16> -> vector<10x8x16xbf16>
    %15 = vector.shape_cast %14 : vector<10x8x16xbf16> to vector<80x16xbf16>
    %c0_12 = arith.constant 0 : index
    %c0_13 = arith.constant 0 : index
    %16 = vector.load %arg5[%c0_12, %c0_13] : memref<16x48xf32, #tpu.memory_space<vmem>>, vector<16x48xf32>
    %17 = arith.truncf %16 : vector<16x48xf32> to vector<16x48xbf16>
    %cst = arith.constant dense<0.000000e+00> : vector<80x48xf32>
    %18 = tpu.matmul %15, %17, %cst {dimension_numbers = #tpu.dot_dimension_numbers<[1], [0], [0], [1], [0, 0, 1, 1], [], []>} : vector<80x16xbf16>, vector<16x48xbf16>, vector<80x48xf32> -> vector<80x48xf32>
    %c0_14 = arith.constant 0 : index
    %c0_15 = arith.constant 0 : index
    %19 = vector.load %arg6[%c0_14, %c0_15] : memref<1x48xf32, #tpu.memory_space<vmem>>, vector<1x48xf32>
    %20 = vector.broadcast %19 : vector<1x48xf32> to vector<80x48xf32>
    %21 = arith.addf %18, %20 : vector<80x48xf32>
    %22 = vector.shape_cast %21 : vector<80x48xf32> to vector<10x8x48xf32>
    %23 = vector.extract_strided_slice %22 {offsets = [0, 0, 0], sizes = [1, 8, 48], strides = [1, 1, 1]} : vector<10x8x48xf32> to vector<1x8x48xf32>
    %24 = vector.shape_cast %23 : vector<1x8x48xf32> to vector<8x48xf32>
    %c0_i32_16 = arith.constant 0 : i32
    %25 = arith.cmpi sgt, %arg1, %c0_i32_16 : i32
    %26 = arith.extui %25 : i1 to i32
    %27 = arith.sitofp %26 : i32 to f32
    %28 = vector.broadcast %27 : f32 to vector<8x48xf32>
    %29 = arith.mulf %24, %28 : vector<8x48xf32>
    %30 = vector.shape_cast %29 : vector<8x48xf32> to vector<1x8x48xf32>
    %31 = vector.extract_strided_slice %22 {offsets = [9, 0, 0], sizes = [1, 8, 48], strides = [1, 1, 1]} : vector<10x8x48xf32> to vector<1x8x48xf32>
    %32 = vector.shape_cast %31 : vector<1x8x48xf32> to vector<8x48xf32>
    %c0_i32_17 = arith.constant 0 : i32
    %33 = arith.cmpi slt, %arg1, %c0_i32_17 : i32
    %34 = arith.extui %33 : i1 to i32
    %35 = arith.sitofp %34 : i32 to f32
    %36 = vector.broadcast %35 : f32 to vector<8x48xf32>
    %37 = arith.mulf %32, %36 : vector<8x48xf32>
    %38 = vector.shape_cast %37 : vector<8x48xf32> to vector<1x8x48xf32>
    %39 = vector.extract_strided_slice %22 {offsets = [1, 0, 0], sizes = [8, 8, 48], strides = [1, 1, 1]} : vector<10x8x48xf32> to vector<8x8x48xf32>
    %40 = tpu.concatenate %30, %39, %38 in 0 : vector<1x8x48xf32>, vector<8x8x48xf32>, vector<1x8x48xf32> -> vector<10x8x48xf32>
    %cst_18 = arith.constant 0.000000e+00 : f32
    %41 = vector.broadcast %cst_18 : f32 to vector<10x1x48xf32>
    %42 = vector.extract_strided_slice %40 {offsets = [0, 0, 0], sizes = [10, 7, 48], strides = [1, 1, 1]} : vector<10x8x48xf32> to vector<10x7x48xf32>
    %43 = tpu.concatenate %41, %42 in 1 : vector<10x1x48xf32>, vector<10x7x48xf32> -> vector<10x8x48xf32>
    %44 = vector.extract_strided_slice %40 {offsets = [0, 1, 0], sizes = [10, 7, 48], strides = [1, 1, 1]} : vector<10x8x48xf32> to vector<10x7x48xf32>
    %45 = tpu.concatenate %44, %41 in 1 : vector<10x7x48xf32>, vector<10x1x48xf32> -> vector<10x8x48xf32>
    %c0_19 = arith.constant 0 : index
    %c0_20 = arith.constant 0 : index
    %c0_21 = arith.constant 0 : index
    %46 = vector.load %arg7[%c0_19, %c0_20, %c0_21] : memref<3x3x48xf32, #tpu.memory_space<vmem>>, vector<3x3x48xf32>
    %cst_22 = arith.constant 0.000000e+00 : f32
    %47 = vector.broadcast %cst_22 : f32 to vector<8x8x48xf32>
    %48 = vector.extract_strided_slice %43 {offsets = [0, 0, 0], sizes = [8, 8, 48], strides = [1, 1, 1]} : vector<10x8x48xf32> to vector<8x8x48xf32>
    %49 = vector.extract_strided_slice %46 {offsets = [0, 0, 0], sizes = [1, 1, 48], strides = [1, 1, 1]} : vector<3x3x48xf32> to vector<1x1x48xf32>
    %50 = vector.shape_cast %49 : vector<1x1x48xf32> to vector<48xf32>
    %51 = vector.shape_cast %50 : vector<48xf32> to vector<1x1x48xf32>
    %52 = vector.broadcast %51 : vector<1x1x48xf32> to vector<8x8x48xf32>
    %53 = arith.mulf %48, %52 : vector<8x8x48xf32>
    %54 = arith.addf %47, %53 : vector<8x8x48xf32>
    %55 = vector.extract_strided_slice %40 {offsets = [0, 0, 0], sizes = [8, 8, 48], strides = [1, 1, 1]} : vector<10x8x48xf32> to vector<8x8x48xf32>
    %56 = vector.extract_strided_slice %46 {offsets = [0, 1, 0], sizes = [1, 1, 48], strides = [1, 1, 1]} : vector<3x3x48xf32> to vector<1x1x48xf32>
    %57 = vector.shape_cast %56 : vector<1x1x48xf32> to vector<48xf32>
    %58 = vector.shape_cast %57 : vector<48xf32> to vector<1x1x48xf32>
    %59 = vector.broadcast %58 : vector<1x1x48xf32> to vector<8x8x48xf32>
    %60 = arith.mulf %55, %59 : vector<8x8x48xf32>
    %61 = arith.addf %54, %60 : vector<8x8x48xf32>
    %62 = vector.extract_strided_slice %45 {offsets = [0, 0, 0], sizes = [8, 8, 48], strides = [1, 1, 1]} : vector<10x8x48xf32> to vector<8x8x48xf32>
    %63 = vector.extract_strided_slice %46 {offsets = [0, 2, 0], sizes = [1, 1, 48], strides = [1, 1, 1]} : vector<3x3x48xf32> to vector<1x1x48xf32>
    %64 = vector.shape_cast %63 : vector<1x1x48xf32> to vector<48xf32>
    %65 = vector.shape_cast %64 : vector<48xf32> to vector<1x1x48xf32>
    %66 = vector.broadcast %65 : vector<1x1x48xf32> to vector<8x8x48xf32>
    %67 = arith.mulf %62, %66 : vector<8x8x48xf32>
    %68 = arith.addf %61, %67 : vector<8x8x48xf32>
    %69 = vector.extract_strided_slice %43 {offsets = [1, 0, 0], sizes = [8, 8, 48], strides = [1, 1, 1]} : vector<10x8x48xf32> to vector<8x8x48xf32>
    %70 = vector.extract_strided_slice %46 {offsets = [1, 0, 0], sizes = [1, 1, 48], strides = [1, 1, 1]} : vector<3x3x48xf32> to vector<1x1x48xf32>
    %71 = vector.shape_cast %70 : vector<1x1x48xf32> to vector<48xf32>
    %72 = vector.shape_cast %71 : vector<48xf32> to vector<1x1x48xf32>
    %73 = vector.broadcast %72 : vector<1x1x48xf32> to vector<8x8x48xf32>
    %74 = arith.mulf %69, %73 : vector<8x8x48xf32>
    %75 = arith.addf %68, %74 : vector<8x8x48xf32>
    %76 = vector.extract_strided_slice %40 {offsets = [1, 0, 0], sizes = [8, 8, 48], strides = [1, 1, 1]} : vector<10x8x48xf32> to vector<8x8x48xf32>
    %77 = vector.extract_strided_slice %46 {offsets = [1, 1, 0], sizes = [1, 1, 48], strides = [1, 1, 1]} : vector<3x3x48xf32> to vector<1x1x48xf32>
    %78 = vector.shape_cast %77 : vector<1x1x48xf32> to vector<48xf32>
    %79 = vector.shape_cast %78 : vector<48xf32> to vector<1x1x48xf32>
    %80 = vector.broadcast %79 : vector<1x1x48xf32> to vector<8x8x48xf32>
    %81 = arith.mulf %76, %80 : vector<8x8x48xf32>
    %82 = arith.addf %75, %81 : vector<8x8x48xf32>
    %83 = vector.extract_strided_slice %45 {offsets = [1, 0, 0], sizes = [8, 8, 48], strides = [1, 1, 1]} : vector<10x8x48xf32> to vector<8x8x48xf32>
    %84 = vector.extract_strided_slice %46 {offsets = [1, 2, 0], sizes = [1, 1, 48], strides = [1, 1, 1]} : vector<3x3x48xf32> to vector<1x1x48xf32>
    %85 = vector.shape_cast %84 : vector<1x1x48xf32> to vector<48xf32>
    %86 = vector.shape_cast %85 : vector<48xf32> to vector<1x1x48xf32>
    %87 = vector.broadcast %86 : vector<1x1x48xf32> to vector<8x8x48xf32>
    %88 = arith.mulf %83, %87 : vector<8x8x48xf32>
    %89 = arith.addf %82, %88 : vector<8x8x48xf32>
    %90 = vector.extract_strided_slice %43 {offsets = [2, 0, 0], sizes = [8, 8, 48], strides = [1, 1, 1]} : vector<10x8x48xf32> to vector<8x8x48xf32>
    %91 = vector.extract_strided_slice %46 {offsets = [2, 0, 0], sizes = [1, 1, 48], strides = [1, 1, 1]} : vector<3x3x48xf32> to vector<1x1x48xf32>
    %92 = vector.shape_cast %91 : vector<1x1x48xf32> to vector<48xf32>
    %93 = vector.shape_cast %92 : vector<48xf32> to vector<1x1x48xf32>
    %94 = vector.broadcast %93 : vector<1x1x48xf32> to vector<8x8x48xf32>
    %95 = arith.mulf %90, %94 : vector<8x8x48xf32>
    %96 = arith.addf %89, %95 : vector<8x8x48xf32>
    %97 = vector.extract_strided_slice %40 {offsets = [2, 0, 0], sizes = [8, 8, 48], strides = [1, 1, 1]} : vector<10x8x48xf32> to vector<8x8x48xf32>
    %98 = vector.extract_strided_slice %46 {offsets = [2, 1, 0], sizes = [1, 1, 48], strides = [1, 1, 1]} : vector<3x3x48xf32> to vector<1x1x48xf32>
    %99 = vector.shape_cast %98 : vector<1x1x48xf32> to vector<48xf32>
    %100 = vector.shape_cast %99 : vector<48xf32> to vector<1x1x48xf32>
    %101 = vector.broadcast %100 : vector<1x1x48xf32> to vector<8x8x48xf32>
    %102 = arith.mulf %97, %101 : vector<8x8x48xf32>
    %103 = arith.addf %96, %102 : vector<8x8x48xf32>
    %104 = vector.extract_strided_slice %45 {offsets = [2, 0, 0], sizes = [8, 8, 48], strides = [1, 1, 1]} : vector<10x8x48xf32> to vector<8x8x48xf32>
    %105 = vector.extract_strided_slice %46 {offsets = [2, 2, 0], sizes = [1, 1, 48], strides = [1, 1, 1]} : vector<3x3x48xf32> to vector<1x1x48xf32>
    %106 = vector.shape_cast %105 : vector<1x1x48xf32> to vector<48xf32>
    %107 = vector.shape_cast %106 : vector<48xf32> to vector<1x1x48xf32>
    %108 = vector.broadcast %107 : vector<1x1x48xf32> to vector<8x8x48xf32>
    %109 = arith.mulf %104, %108 : vector<8x8x48xf32>
    %110 = arith.addf %103, %109 : vector<8x8x48xf32>
    %c0_23 = arith.constant 0 : index
    %c0_24 = arith.constant 0 : index
    %111 = vector.load %arg8[%c0_23, %c0_24] : memref<1x48xf32, #tpu.memory_space<vmem>>, vector<1x48xf32>
    %112 = vector.shape_cast %111 : vector<1x48xf32> to vector<1x1x48xf32>
    %113 = vector.broadcast %112 : vector<1x1x48xf32> to vector<8x8x48xf32>
    %114 = arith.addf %110, %113 : vector<8x8x48xf32>
    %115 = vector.extract_strided_slice %114 {offsets = [0, 0, 0], sizes = [8, 8, 16], strides = [1, 1, 1]} : vector<8x8x48xf32> to vector<8x8x16xf32>
    %116 = vector.extract_strided_slice %114 {offsets = [0, 0, 16], sizes = [8, 8, 16], strides = [1, 1, 1]} : vector<8x8x48xf32> to vector<8x8x16xf32>
    %117 = vector.extract_strided_slice %114 {offsets = [0, 0, 32], sizes = [8, 8, 16], strides = [1, 1, 1]} : vector<8x8x48xf32> to vector<8x8x16xf32>
    %118 = arith.truncf %117 : vector<8x8x16xf32> to vector<8x8x16xbf16>
    %c0_25 = arith.constant 0 : index
    %c0_26 = arith.constant 0 : index
    %c0_27 = arith.constant 0 : index
    %c0_28 = arith.constant 0 : index
    %119 = vector.load %arg9[%c0_25, %c0_26, %c0_27, %c0_28] : memref<1x8x8x16xbf16, #tpu.memory_space<vmem>>, vector<1x8x8x16xbf16>
    %120 = vector.shape_cast %119 : vector<1x8x8x16xbf16> to vector<8x8x16xbf16>
    %121 = vector.shape_cast %118 : vector<8x8x16xbf16> to vector<1x8x8x16xbf16>
    tpu.vector_store %arg9[%c0_25, %c0_26, %c0_27, %c0_28], %121 {strides = array<i32>} : memref<1x8x8x16xbf16, #tpu.memory_space<vmem>>, vector<1x8x8x16xbf16>,
    %122 = vector.shape_cast %115 : vector<8x8x16xf32> to vector<64x16xf32>
    %123 = vector.shape_cast %116 : vector<8x8x16xf32> to vector<64x16xf32>
    %c0_29 = arith.constant 0 : index
    %c0_30 = arith.constant 0 : index
    %c0_31 = arith.constant 0 : index
    %124 = vector.load %arg10[%c0_29, %c0_30, %c0_31] : memref<1x16x16xf32, #tpu.memory_space<vmem>>, vector<1x16x16xf32>
    %125 = vector.shape_cast %124 : vector<1x16x16xf32> to vector<16x16xf32>
    %126 = arith.truncf %122 : vector<64x16xf32> to vector<64x16xbf16>
    %127 = arith.truncf %123 : vector<64x16xf32> to vector<64x16xbf16>
    %cst_32 = arith.constant dense<0.000000e+00> : vector<16x16xf32>
    %128 = tpu.matmul %126, %127, %cst_32 {dimension_numbers = #tpu.dot_dimension_numbers<[0], [0], [1], [1], [0, 1, 1, 1], [], []>} : vector<64x16xbf16>, vector<64x16xbf16>, vector<16x16xf32> -> vector<16x16xf32>
    %129 = arith.addf %125, %128 : vector<16x16xf32>
    %c0_33 = arith.constant 0 : index
    %c0_34 = arith.constant 0 : index
    %c0_35 = arith.constant 0 : index
    %130 = vector.load %arg10[%c0_33, %c0_34, %c0_35] : memref<1x16x16xf32, #tpu.memory_space<vmem>>, vector<1x16x16xf32>
    %131 = vector.shape_cast %130 : vector<1x16x16xf32> to vector<16x16xf32>
    %132 = vector.shape_cast %129 : vector<16x16xf32> to vector<1x16x16xf32>
    tpu.vector_store %arg10[%c0_33, %c0_34, %c0_35], %132 {strides = array<i32>} : memref<1x16x16xf32, #tpu.memory_space<vmem>>, vector<1x16x16xf32>,
    %c0_36 = arith.constant 0 : index
    %c0_37 = arith.constant 0 : index
    %c0_38 = arith.constant 0 : index
    %133 = vector.load %arg11[%c0_36, %c0_37, %c0_38] : memref<1x1x16xf32, #tpu.memory_space<vmem>>, vector<1x1x16xf32>
    %134 = vector.shape_cast %133 : vector<1x1x16xf32> to vector<1x16xf32>
    %135 = arith.mulf %122, %122 : vector<64x16xf32>
    %cst_39 = arith.constant dense<0.000000e+00> : vector<16xf32>
    %136 = vector.multi_reduction <add>, %135, %cst_39 [0] : vector<64x16xf32> to vector<16xf32>
    %137 = vector.shape_cast %136 : vector<16xf32> to vector<1x16xf32>
    %138 = arith.addf %134, %137 : vector<1x16xf32>
    %c0_40 = arith.constant 0 : index
    %c0_41 = arith.constant 0 : index
    %c0_42 = arith.constant 0 : index
    %139 = vector.load %arg11[%c0_40, %c0_41, %c0_42] : memref<1x1x16xf32, #tpu.memory_space<vmem>>, vector<1x1x16xf32>
    %140 = vector.shape_cast %139 : vector<1x1x16xf32> to vector<1x16xf32>
    %141 = vector.shape_cast %138 : vector<1x16xf32> to vector<1x1x16xf32>
    tpu.vector_store %arg11[%c0_40, %c0_41, %c0_42], %141 {strides = array<i32>} : memref<1x1x16xf32, #tpu.memory_space<vmem>>, vector<1x1x16xf32>,
    %c0_43 = arith.constant 0 : index
    %c0_44 = arith.constant 0 : index
    %c0_45 = arith.constant 0 : index
    %142 = vector.load %arg12[%c0_43, %c0_44, %c0_45] : memref<1x1x16xf32, #tpu.memory_space<vmem>>, vector<1x1x16xf32>
    %143 = vector.shape_cast %142 : vector<1x1x16xf32> to vector<1x16xf32>
    %144 = arith.mulf %123, %123 : vector<64x16xf32>
    %cst_46 = arith.constant dense<0.000000e+00> : vector<16xf32>
    %145 = vector.multi_reduction <add>, %144, %cst_46 [0] : vector<64x16xf32> to vector<16xf32>
    %146 = vector.shape_cast %145 : vector<16xf32> to vector<1x16xf32>
    %147 = arith.addf %143, %146 : vector<1x16xf32>
    %c0_47 = arith.constant 0 : index
    %c0_48 = arith.constant 0 : index
    %c0_49 = arith.constant 0 : index
    %148 = vector.load %arg12[%c0_47, %c0_48, %c0_49] : memref<1x1x16xf32, #tpu.memory_space<vmem>>, vector<1x1x16xf32>
    %149 = vector.shape_cast %148 : vector<1x1x16xf32> to vector<1x16xf32>
    %150 = vector.shape_cast %147 : vector<1x16xf32> to vector<1x1x16xf32>
    tpu.vector_store %arg12[%c0_47, %c0_48, %c0_49], %150 {strides = array<i32>} : memref<1x1x16xf32, #tpu.memory_space<vmem>>, vector<1x1x16xf32>,
    return
  }
  func.func @transform_0(%arg0: i32, %arg1: i32) -> (i32, i32, i32, i32) {
    %c0_i32 = arith.constant 0 : i32
    %c0_i32_0 = arith.constant 0 : i32
    %c0_i32_1 = arith.constant 0 : i32
    return %arg0, %arg1, %c0_i32, %c0_i32_0 : i32, i32, i32, i32
  }
  func.func @transform_1(%arg0: i32, %arg1: i32) -> (i32, i32, i32, i32) {
    %c8_i32 = arith.constant 8 : i32
    %0 = arith.muli %arg1, %c8_i32 : i32
    %c1_i32 = arith.constant 1 : i32
    %1 = arith.subi %0, %c1_i32 : i32
    %c0_i32 = arith.constant 0 : i32
    %2 = arith.maxsi %1, %c0_i32 : i32
    %c0_i32_0 = arith.constant 0 : i32
    %c0_i32_1 = arith.constant 0 : i32
    %c0_i32_2 = arith.constant 0 : i32
    return %arg0, %2, %c0_i32_0, %c0_i32_1 : i32, i32, i32, i32
  }
  func.func @transform_2(%arg0: i32, %arg1: i32) -> (i32, i32, i32, i32) {
    %c8_i32 = arith.constant 8 : i32
    %0 = arith.muli %arg1, %c8_i32 : i32
    %c8_i32_0 = arith.constant 8 : i32
    %1 = arith.addi %0, %c8_i32_0 : i32
    %c7_i32 = arith.constant 7 : i32
    %2 = arith.minsi %1, %c7_i32 : i32
    %c0_i32 = arith.constant 0 : i32
    %c0_i32_1 = arith.constant 0 : i32
    %c0_i32_2 = arith.constant 0 : i32
    return %arg0, %2, %c0_i32, %c0_i32_1 : i32, i32, i32, i32
  }
  func.func @transform_3(%arg0: i32, %arg1: i32) -> (i32, i32) {
    %c0_i32 = arith.constant 0 : i32
    %c0_i32_0 = arith.constant 0 : i32
    %c0_i32_1 = arith.constant 0 : i32
    return %c0_i32, %c0_i32_0 : i32, i32
  }
  func.func @transform_4(%arg0: i32, %arg1: i32) -> (i32, i32) {
    %c0_i32 = arith.constant 0 : i32
    %c0_i32_0 = arith.constant 0 : i32
    %c0_i32_1 = arith.constant 0 : i32
    return %c0_i32, %c0_i32_0 : i32, i32
  }
  func.func @transform_5(%arg0: i32, %arg1: i32) -> (i32, i32, i32) {
    %c0_i32 = arith.constant 0 : i32
    %c0_i32_0 = arith.constant 0 : i32
    %c0_i32_1 = arith.constant 0 : i32
    %c0_i32_2 = arith.constant 0 : i32
    return %c0_i32, %c0_i32_0, %c0_i32_1 : i32, i32, i32
  }
  func.func @transform_6(%arg0: i32, %arg1: i32) -> (i32, i32) {
    %c0_i32 = arith.constant 0 : i32
    %c0_i32_0 = arith.constant 0 : i32
    %c0_i32_1 = arith.constant 0 : i32
    return %c0_i32, %c0_i32_0 : i32, i32
  }
  func.func @transform_7(%arg0: i32, %arg1: i32) -> (i32, i32, i32, i32) {
    %c0_i32 = arith.constant 0 : i32
    %c0_i32_0 = arith.constant 0 : i32
    %c0_i32_1 = arith.constant 0 : i32
    return %arg0, %arg1, %c0_i32, %c0_i32_0 : i32, i32, i32, i32
  }
  func.func @transform_8(%arg0: i32, %arg1: i32) -> (i32, i32, i32) {
    %c0_i32 = arith.constant 0 : i32
    %c0_i32_0 = arith.constant 0 : i32
    %c0_i32_1 = arith.constant 0 : i32
    return %arg0, %c0_i32, %c0_i32_0 : i32, i32, i32
  }
  func.func @transform_9(%arg0: i32, %arg1: i32) -> (i32, i32, i32) {
    %c0_i32 = arith.constant 0 : i32
    %c0_i32_0 = arith.constant 0 : i32
    %c0_i32_1 = arith.constant 0 : i32
    return %arg0, %c0_i32, %c0_i32_0 : i32, i32, i32
  }
  func.func @transform_10(%arg0: i32, %arg1: i32) -> (i32, i32, i32) {
    %c0_i32 = arith.constant 0 : i32
    %c0_i32_0 = arith.constant 0 : i32
    %c0_i32_1 = arith.constant 0 : i32
    return %arg0, %c0_i32, %c0_i32_0 : i32, i32, i32
  }
}

module attributes {stable_mosaic.version = 11 : i64} {
  func.func @_attn_proj_residual_kernel(%arg0: i32, %arg1: i32, %arg2: memref<1x64x16xbf16, #tpu.memory_space<vmem>>, %arg3: memref<1x16x64xf32, #tpu.memory_space<vmem>>, %arg4: memref<1x16x16xbf16, #tpu.memory_space<vmem>>, %arg5: memref<16x1xf32, #tpu.memory_space<vmem>>, %arg6: memref<1x16x64xf32, #tpu.memory_space<vmem>>) attributes {dimension_semantics = [#tpu.dimension_semantics<parallel>, #tpu.dimension_semantics<parallel>], iteration_bounds = array<i64: 2, 1>, scalar_prefetch = 0 : i64, scratch_operands = 0 : i64, tpu.core_type = #tpu.core_type<tc>, window_params = [{transform_indices = @transform_0, window_bounds = array<i64: 1, 64, 16>}, {transform_indices = @transform_1, window_bounds = array<i64: 1, 16, 64>}, {transform_indices = @transform_2, window_bounds = array<i64: 1, 16, 16>}, {pipeline_mode = #tpu.pipeline_mode<synchronous>, transform_indices = @transform_3, window_bounds = array<i64: 16, 1>}, {transform_indices = @transform_4, window_bounds = array<i64: 1, 16, 64>}]} {
    %c0 = arith.constant 0 : index
    %c0_0 = arith.constant 0 : index
    %c0_1 = arith.constant 0 : index
    %0 = vector.load %arg2[%c0, %c0_0, %c0_1] : memref<1x64x16xbf16, #tpu.memory_space<vmem>>, vector<1x64x16xbf16>
    %1 = vector.shape_cast %0 : vector<1x64x16xbf16> to vector<64x16xbf16>
    %c0_2 = arith.constant 0 : index
    %c0_3 = arith.constant 0 : index
    %c0_4 = arith.constant 0 : index
    %2 = vector.load %arg4[%c0_2, %c0_3, %c0_4] : memref<1x16x16xbf16, #tpu.memory_space<vmem>>, vector<1x16x16xbf16>
    %3 = vector.shape_cast %2 : vector<1x16x16xbf16> to vector<16x16xbf16>
    %cst = arith.constant dense<0.000000e+00> : vector<16x64xf32>
    %4 = tpu.matmul %3, %1, %cst {dimension_numbers = #tpu.dot_dimension_numbers<[1], [1], [0], [0], [0, 0, 1, 0], [], []>} : vector<16x16xbf16>, vector<64x16xbf16>, vector<16x64xf32> -> vector<16x64xf32>
    %c0_5 = arith.constant 0 : index
    %c0_6 = arith.constant 0 : index
    %5 = vector.load %arg5[%c0_5, %c0_6] : memref<16x1xf32, #tpu.memory_space<vmem>>, vector<16x1xf32>
    %6 = vector.broadcast %5 : vector<16x1xf32> to vector<16x64xf32>
    %7 = arith.addf %4, %6 : vector<16x64xf32>
    %c0_7 = arith.constant 0 : index
    %c0_8 = arith.constant 0 : index
    %c0_9 = arith.constant 0 : index
    %8 = vector.load %arg3[%c0_7, %c0_8, %c0_9] : memref<1x16x64xf32, #tpu.memory_space<vmem>>, vector<1x16x64xf32>
    %9 = vector.shape_cast %8 : vector<1x16x64xf32> to vector<16x64xf32>
    %10 = arith.addf %7, %9 : vector<16x64xf32>
    %c0_10 = arith.constant 0 : index
    %c0_11 = arith.constant 0 : index
    %c0_12 = arith.constant 0 : index
    %11 = vector.load %arg6[%c0_10, %c0_11, %c0_12] : memref<1x16x64xf32, #tpu.memory_space<vmem>>, vector<1x16x64xf32>
    %12 = vector.shape_cast %11 : vector<1x16x64xf32> to vector<16x64xf32>
    %13 = vector.shape_cast %10 : vector<16x64xf32> to vector<1x16x64xf32>
    tpu.vector_store %arg6[%c0_10, %c0_11, %c0_12], %13 {strides = array<i32>} : memref<1x16x64xf32, #tpu.memory_space<vmem>>, vector<1x16x64xf32>,
    return
  }
  func.func @transform_0(%arg0: i32, %arg1: i32) -> (i32, i32, i32) {
    %c0_i32 = arith.constant 0 : i32
    %c0_i32_0 = arith.constant 0 : i32
    return %arg0, %arg1, %c0_i32 : i32, i32, i32
  }
  func.func @transform_1(%arg0: i32, %arg1: i32) -> (i32, i32, i32) {
    %c0_i32 = arith.constant 0 : i32
    %c0_i32_0 = arith.constant 0 : i32
    return %arg0, %c0_i32, %arg1 : i32, i32, i32
  }
  func.func @transform_2(%arg0: i32, %arg1: i32) -> (i32, i32, i32) {
    %c0_i32 = arith.constant 0 : i32
    %c0_i32_0 = arith.constant 0 : i32
    %c0_i32_1 = arith.constant 0 : i32
    return %arg0, %c0_i32, %c0_i32_0 : i32, i32, i32
  }
  func.func @transform_3(%arg0: i32, %arg1: i32) -> (i32, i32) {
    %c0_i32 = arith.constant 0 : i32
    %c0_i32_0 = arith.constant 0 : i32
    %c0_i32_1 = arith.constant 0 : i32
    return %c0_i32, %c0_i32_0 : i32, i32
  }
  func.func @transform_4(%arg0: i32, %arg1: i32) -> (i32, i32, i32) {
    %c0_i32 = arith.constant 0 : i32
    %c0_i32_0 = arith.constant 0 : i32
    return %arg0, %c0_i32, %arg1 : i32, i32, i32
  }
}

</mosaic_0001>

<bundles_post_ra>
// kernel: lam_module_v2_forward.3
= control target key start
LH: loop header
LB: loop body
LE: loop exit
PB: predicated region body
PF: predicated region fallthrough
CT: control target
= control target key end

     0   :  { %s637_s15 = smov 0   ;;  %s639_s16 = smov 0   ;;  %s692_s0 = inlined_call_operand.vmem [shape: bf16[2,64,16], index: 0, kind: input, shape index: {}]   ;;  %s693_s1 = inlined_call_operand.vmem [shape: f32[2,16,64], index: 1, kind: input, shape index: {}]   ;;  %s694_s2 = inlined_call_operand.vmem [shape: bf16[2,16,16], index: 2, kind: input, shape index: {}]   ;;  %s695_s3 = inlined_call_operand.vmem [shape: f32[16,1], index: 3, kind: input, shape index: {}]   ;;  %s696_s4 = inlined_call_operand.vmem [shape: f32[2,16,64], index: 4, kind: output, shape index: {}]  }
   0x1   :  { %s641_s17 = smov 0  }
   0x2 LB: > { %s26_s18 = sadd.s32 1, %s603_s16  ;;  %p514_p0 = scmp.ge.s32.totalorder %s607_s17, 1  ;;  %s607_s17 = sphi %s641_s17, %s14_s17   ;;  %s603_s16 = sphi %s639_s16, %s698_s16   ;;  %s599_s15 = sphi %s637_s15, %s697_s15  }
   0x3   : > { %p28_p1 = scmp.ge.s32.totalorder %s26_s18, 2  ;;  %p208_p2 = scmp.lt.s32.totalorder %s607_s17, 3 }
   0x5   : > { %s700_s18 = smov (%p28_p1, %s26_s18), 0  ;;  %p209_p3 = pnand %p514_p0, %p208_p2 }
   0x6   : > { %p255_p4 = scmp.lt.s32.totalorder (!%p209_p3), %s599_s15, 1  ;;  %v296_v0 = vld [vmem:[%s695_s3] sm:$0xff] (!%p209_p3)  ;;  %v609_v1 = vmov (!%p209_p3), 0.0   ;;  %vm610_vm0 = vmmov (!%p209_p3), 0   ;;  %v611_v2 = vmov (!%p209_p3), 0   ;;  %v297_v3 = vld [vmem:[%s695_s3 + $0x8] sm:$0xff] (!%p209_p3) }
   0x7   : > { %212 = sbr.rel (%p209_p3) target bundleno = 269 (0x10d), region = 36  ;;  %540 = vmatprep.subr.bf16.mxu0 (!%p209_p3), %v609_v1  ;;  %548 = vmatprep.mubr.msk.bf16.mxu0 (!%p209_p3), %vm610_vm0, %v609_v1  ;;  %vm333_vm1 = vcmask (!%p209_p3), 130048   ;;  %vm394_vm2 = vcmask (!%p209_p3), 523264  }
   0x8   : > { %579 = vset.pattern.permute.xlu0 (!%p209_p3), %v611_v2 }
   0x9   : > { %300 = vperm.xlu0 (!%p209_p3), %579, %v296_v0  }
   0xd   : > { %305 = vperm.xlu0 (!%p209_p3), %579, %v297_v3  }
   0xe   : > { %s702_s15 = smov (!%p255_p4, %s599_s15), 1 }
   0xf   : > { %s531_s21 = sshll.u32 %s702_s15, 5  ;;  %s533_s27 = sshll.u32 %s702_s15, 3 }
  0x10   : > { %s262_s26 = scalar_lea.vmem %s692_s0, %s531_s21  ;;  %s276_s30 = scalar_lea.vmem %s694_s2, %s533_s27 }
  0x11   : > { %v580_v4 = vld [vmem:[%s262_s26] sm:$0xff]   ;;  %v581_v6 = vld [vmem:[%s262_s26 + $0x8] sm:$0xff]   ;;  %v582_v8 = vld [vmem:[%s262_s26 + $0x10] sm:$0xff]   ;;  %s532_s5 = sshll.u32 %s702_s15, 4 }
  0x12   : > { %v338_v5 = vsel %vm333_vm1, %v580_v4, 0  ;;  %v341_v7 = vsel %vm333_vm1, %v581_v6, 0  ;;  %v344_v9 = vsel %vm333_vm1, %v582_v8, 0  ;;  %v583_v10 = vld [vmem:[%s262_s26 + $0x18] sm:$0xff]   ;;  %v584_v12 = vld [vmem:[%s276_s30] sm:$0xff]   ;;  %s271_s8 = scalar_lea.vmem %s693_s1, %s532_s5  ;;  %s284_s11 = scalar_lea.vmem %s696_s4, %s532_s5 }
  0x13   : > { %541 = vmatpush3.bf16.xpose.msra.mxu0 %v338_v5  ;;  %v347_v11 = vsel %vm333_vm1, %v583_v10, 0  ;;  %v390_v15 = vld [vmem:[%s271_s8] sm:$0xff]  ;;  %v391_v20 = vld [vmem:[%s271_s8 + $0x8] sm:$0xff] }
  0x14   : > { %542 = vmatprep.subr.bf16.mxu0 %v609_v1 }
  0x1b   : > { %543 = vmatpush3.bf16.xpose.msra.mxu0 %v341_v7 }
  0x1c   : > { %544 = vmatprep.subr.bf16.mxu0 %v609_v1 }
  0x23   : > { %545 = vmatpush3.bf16.xpose.msra.mxu0 %v344_v9 }
  0x24   : > { %546 = vmatprep.subr.bf16.mxu0 %v609_v1 }
  0x2b   : > { %547 = vmatpush3.bf16.xpose.msra.mxu0 %v347_v11 }
  0x32   : > { %549 = vmatmul.mubr.msk.bf16.vlgmr.msra.gmra.mrb[0].mxu0 %vm333_vm1, %v584_v12 }
  0x88   : > { %v301_v13 = vpop.permute.xlu0 %300 }
  0x8c   : > { %v306_v18 = vpop.permute.xlu0 %305 }
 0x105   : > { %v383_v14 = vpop.f32.mrb[0].mxu0 }
 0x106   : > { %v384_v16 = vadd.f32 %v383_v14, %v301_v13  ;;  %v550_v17 = vpop.f32.mrb[1].mxu0 }
 0x107   : > { %v386_v19 = vpop.f32.mrb[2].mxu0 }
 0x108   : > { %v392_v21 = vadd.f32 %v390_v15, %v384_v16  ;;  %v387_v22 = vadd.f32 %v386_v19, %v306_v18  ;;  %v551_v23 = vpop.f32.mrb[3].mxu0 }
 0x10a   : > { %395 = vst.msk [vmem:[%s284_s11] sm:$0xff] %vm394_vm2, %v392_v21  ;;  %v393_v24 = vadd.f32 %v391_v20, %v387_v22 }
 0x10c   : > { %396 = vst.msk [vmem:[%s284_s11 + $0x8] sm:$0xff] %vm394_vm2, %v393_v24 }
 0x10d PF: > { %s14_s17 = sadd.s32 1, %s607_s17   ;;  %s697_s15 = smov %s603_s16 }
 0x10e   : > { %p11_p5 = scmp.ge.s32.totalorder %s14_s17, 4   ;;  %s698_s16 = smov %s700_s18 }
 0x110   :  { %13 = sbr.rel (!%p11_p5) target bundleno = 2 (0x2), region = 72 }

// kernel: lam_module_v2_forward.2
= control target key start
LH: loop header
LB: loop body
LE: loop exit
PB: predicated region body
PF: predicated region fallthrough
CT: control target
= control target key end

     0   :  { %s1634_s13 = smov 0   ;;  %s1636_s14 = smov 0   ;;  %s2117_s0 = inlined_call_operand.vmem [shape: f32[2,8,8,16], index: 0, kind: input, shape index: {}, may-alias: {0,1,2}]   ;;  %s2118_s1 = inlined_call_operand.vmem [shape: f32[2,8,8,16], index: 1, kind: input, shape index: {}, may-alias: {0,1,2}]   ;;  %s2119_s2 = inlined_call_operand.vmem [shape: f32[2,8,8,16], index: 2, kind: input, shape index: {}, may-alias: {0,1,2}]   ;;  %s2120_s3 = inlined_call_operand.vmem [shape: f32[16,48], index: 3, kind: input, shape index: {}]   ;;  %s2121_s4 = inlined_call_operand.vmem [shape: f32[1,48], index: 4, kind: input, shape index: {}]   ;;  %s2122_s5 = inlined_call_operand.vmem [shape: f32[3,3,48], index: 5, kind: input, shape index: {}]   ;;  %s2123_s6 = inlined_call_operand.vmem [shape: f32[1,48], index: 6, kind: input, shape index: {}]   ;;  %s2124_s7 = inlined_call_operand.vmem [shape: bf16[2,8,8,16], index: 7, kind: output, shape index: {0}]   ;;  %s2125_s8 = inlined_call_operand.vmem [shape: f32[2,16,16], index: 8, kind: output, shape index: {1}]   ;;  %s2126_s9 = inlined_call_operand.vmem [shape: f32[2,1,16], index: 9, kind: output, shape index: {2}]   ;;  %s2127_s10 = inlined_call_operand.vmem [shape: f32[2,1,16], index: 10, kind: output, shape index: {3}]  }
   0x1   :  { %s1638_s15 = smov 0  }
   0x2 LB: > { %s33_s16 = sadd.s32 1, %s1568_s14  ;;  %p1419_p0 = scmp.ge.s32.totalorder %s1572_s15, 1  ;;  %s1572_s15 = sphi %s1638_s15, %s21_s15   ;;  %s1568_s14 = sphi %s1636_s14, %s2129_s14   ;;  %s1564_s13 = sphi %s1634_s13, %s2128_s13  }
   0x3   : > { %p35_p1 = scmp.ge.s32.totalorder %s33_s16, 2  ;;  %p402_p2 = scmp.lt.s32.totalorder %s1572_s15, 3 }
   0x5   : > { %s2131_s16 = smov (%p35_p1, %s33_s16), 0  ;;  %p403_p3 = pnand %p1419_p0, %p402_p2 }
   0x6   : > { %v577_v0 = vld [vmem:[%s2120_s3] sm:$0xff] (!%p403_p3)  ;;  %v578_v1 = vld [vmem:[%s2120_s3 + $0x8] sm:$0xff] (!%p403_p3)  ;;  %p484_p4 = scmp.lt.s32.totalorder (!%p403_p3), %s1564_s13, 1  ;;  %v1574_v2 = vmov (!%p403_p3), 0.0   ;;  %vm1575_vm0 = vmmov (!%p403_p3), 0   ;;  %vm551_vm1 = vcmask (!%p403_p3), 130048   ;;  %v786_v19 = vlaneseq (!%p403_p3) }
   0x7   : > { %406 = sbr.rel (%p403_p3) target bundleno = 637 (0x27d), region = 48  ;;  %1484 = vmatprep.subr.bf16.mxu0 (!%p403_p3), %v1574_v2  ;;  %v579_v3 = vpack.c.bf16 (!%p403_p3), %v578_v1, %v577_v0  ;;  %1486 = vmatprep.mubr.msk.bf16.mxu0 (!%p403_p3), %vm1575_vm0, %v1574_v2  ;;  %vm554_vm2 = vcmask (!%p403_p3), 122880   ;;  %v783_v22 = vld [vmem:[%s2122_s5] sm:$0x7] (!%p403_p3)  ;;  %v784_v25 = vld [vmem:[%s2122_s5 + $0x4] sm:$0x7] (!%p403_p3) }
   0x8   : > { %1518 = vmatprep.subr.bf16.mxu1 (!%p403_p3), %v1574_v2  ;;  %1498 = vmatprep.mubr.msk.bf16.mxu1 (!%p403_p3), %vm1575_vm0, %v1574_v2  ;;  %v1699_v20 = vshrl.u32 (!%p403_p3), %v786_v19, 7  ;;  %v1713_v26 = vld [vmem:[%s2121_s4] ss:$0 sm:$0xff] (!%p403_p3)  ;;  %v785_v27 = vld [vmem:[%s2122_s5 + $0x8] sm:$0x7] (!%p403_p3)  ;;  %vm741_vm3 = vcmask (!%p403_p3), 1040384  }
   0x9   : > { %1485 = vmatpush3.bf16.msra.mxu0 (!%p403_p3), %v579_v3  ;;  %1519 = vmatpush3.bf16.msra.mxu1 (!%p403_p3), %v579_v3  ;;  %vm772_vm4 = vcmask (!%p403_p3), 1046528   ;;  %vm1167_vm5 = vcmask (!%p403_p3), 261248   ;;  %s1576_s29 = smov (!%p403_p3), 112   ;;  %s1577_s30 = smov (!%p403_p3), 96   ;;  %vm1037_vm6 = vcmask (!%p403_p3), 125952   ;;  %vm1084_vm7 = vcmask (!%p403_p3), 523264  }
   0xa   : > { %1506 = vmatprep.subr.bf16.mxu1 (!%p403_p3), %v1574_v2  ;;  %v808_v21 = vsub.s32 (!%p403_p3), 1, %v1699_v20  ;;  %v788_v23 = vsub.s32 (!%p403_p3), 0, %v1699_v20  ;;  %v828_v24 = vsub.s32 (!%p403_p3), 2, %v1699_v20 }
   0xc   : > { %v1718_v29 = vrot.slane (!%p403_p3), %v783_v22, %v808_v21  ;;  %v1720_v30 = vrot.slane (!%p403_p3), %v784_v25, %v808_v21  ;;  %v1723_v32 = vrot.slane (!%p403_p3), %v783_v22, %v788_v23  ;;  %v1725_v33 = vrot.slane (!%p403_p3), %v783_v22, %v828_v24 }
   0xd   : > { %v1727_v37 = vrot.slane (!%p403_p3), %v784_v25, %v788_v23  ;;  %v1729_v38 = vrot.slane (!%p403_p3), %v784_v25, %v828_v24  ;;  %v1734_v41 = vrot.slane (!%p403_p3), %v785_v27, %v808_v21  ;;  %v1737_v46 = vrot.slane (!%p403_p3), %v785_v27, %v788_v23 }
   0xe   : > { %s2133_s13 = smov (!%p484_p4, %s1564_s13), 1  ;;  %v1739_v47 = vrot.slane %v785_v27, %v828_v24 }
   0xf   : > { %s1453_s21 = sshll.u32 %s2133_s13, 6  ;;  %s1694_s18 = scalar_lea.vmem %s2126_s9, %s2133_s13 }
  0x10   : > { %s491_s24 = scalar_lea.vmem %s2117_s0, %s1453_s21  ;;  %s504_s27 = scalar_lea.vmem %s2118_s1, %s1453_s21  ;;  %555 = vst.msk [vmem:[%s1694_s18] sm:$0x1] %vm554_vm2, %v1574_v2 }
  0x11   : > { %v557_v4 = vld [vmem:[%s491_s24] sm:$0xff]  ;;  %s1456_s28 = sadd.s32 56, %s1453_s21  ;;  %v562_v7 = vld [vmem:[%s491_s24 + $0x28] sm:$0xff]  ;;  %v563_v8 = vld [vmem:[%s491_s24 + $0x30] sm:$0xff]  ;;  %s2050_s17 = scalar_lea.vmem %s2127_s10, %s2133_s13 }
  0x12   : > { %v573_v5 = vld [vmem:[%s504_s27] sm:$0xff]  ;;  %v1462_v9 = vpack.c.bf16 %v563_v8, %v562_v7  ;;  %s520_s11 = scalar_lea.vmem %s2119_s2, %s1456_s28  ;;  %v558_v10 = vld [vmem:[%s491_s24 + $0x8] sm:$0xff]  ;;  %v559_v11 = vld [vmem:[%s491_s24 + $0x10] sm:$0xff]  ;;  %556 = vst.msk [vmem:[%s2050_s17] sm:$0x1] %vm554_vm2, %v1574_v2  ;;  %s1458_s19 = sshll.u32 %s2133_s13, 4 }
  0x13   : > { %v1459_v6 = vpack.c.bf16 %v557_v4, %v573_v5  ;;  %v564_v12 = vld [vmem:[%s491_s24 + $0x38] sm:$0xff]  ;;  %v575_v13 = vld [vmem:[%s520_s11] sm:$0xff]  ;;  %v1460_v14 = vpack.c.bf16 %v559_v11, %v558_v10  ;;  %s2067_s22 = scalar_lea.vmem %s2125_s8, %s1458_s19 }
  0x14   : > { %1499 = vmatmul.mubr.msk.bf16.vlgmr.msra.gmra.mrb[0].mxu1 %vm551_vm1, %v1462_v9  ;;  %v1463_v15 = vpack.c.bf16 %v575_v13, %v564_v12  ;;  %v560_v16 = vld [vmem:[%s491_s24 + $0x18] sm:$0xff]  ;;  %v561_v17 = vld [vmem:[%s491_s24 + $0x20] sm:$0xff]  ;;  %552 = vst.msk [vmem:[%s2067_s22] sm:$0xff] %vm551_vm1, %v1574_v2  ;;  %553 = vst.msk [vmem:[%s2067_s22 + $0x8] sm:$0xff] %vm551_vm1, %v1574_v2 }
  0x15   : > { %1487 = vmatmul.mubr.msk.bf16.vlgmr.msra.gmra.mrb[0].mxu0 %vm551_vm1, %v1459_v6  ;;  %1502 = vmatprep.mubr.msk.bf16.mxu1 %vm1575_vm0, %v1574_v2  ;;  %v1461_v18 = vpack.c.bf16 %v561_v17, %v560_v16 }
  0x16   : > { %1490 = vmatprep.mubr.msk.bf16.mxu0 %vm1575_vm0, %v1574_v2 }
  0x1c   : > { %1503 = vmatmul.mubr.msk.bf16.gmra.mrb[4].mxu1 %vm551_vm1, %v1463_v15 }
  0x1d   : > { %1491 = vmatmul.mubr.msk.bf16.gmra.mrb[4].mxu0 %vm551_vm1, %v1460_v14  ;;  %1514 = vmatprep.mubr.msk.bf16.mxu1 %vm1575_vm0, %v1574_v2 }
  0x1e   : > { %1494 = vmatprep.mubr.msk.bf16.mxu0 %vm1575_vm0, %v1574_v2 }
  0x25   : > { %1495 = vmatmul.mubr.msk.bf16.gmra.mrb[8].mxu0 %vm551_vm1, %v1461_v18 }
  0xe7   : > { %v686_v35 = vpop.f32.mrb[0].mxu1 }
  0xe8   : > { %v662_v28 = vpop.f32.mrb[0].mxu0  ;;  %v1732_v39 = vadd.f32 %v1713_v26, %v686_v35  ;;  %v1500_v40 = vpop.f32.mrb[1].mxu1 }
  0xe9   : > { %v663_v31 = vadd.f32 %v1713_v26, %v662_v28  ;;  %v1488_v34 = vpop.f32.mrb[1].mxu0  ;;  %v689_v45 = vpop.f32.mrb[2].mxu1 }
  0xea   : > { %v665_v36 = vpop.f32.mrb[2].mxu0  ;;  %v727_v48 = vrot.slane %v1732_v39, 7  ;;  %v758_v49 = vrot.slane %v1732_v39, 1  ;;  %v816_v50 = vmul.f32 %v1718_v29, %v1732_v39  ;;  %v1747_v51 = vmul.f32 %v1720_v30, %v1732_v39  ;;  %v1501_v52 = vpop.f32.mrb[3].mxu1 }
  0xeb   : > { %v705_v42 = vmul.f32 0.0, %v663_v31  ;;  %v666_v43 = vadd.f32 %v1713_v26, %v665_v36  ;;  %v1489_v44 = vpop.f32.mrb[3].mxu0 }
  0xec   : > { %v1753_v60 = vsel %vm741_vm3, 0.0, %v727_v48  ;;  %v1759_v0 = vsel %vm772_vm4, %v758_v49, 0.0 }
  0xed   : > { %v721_v53 = vrot.slane %v705_v42, 7  ;;  %v752_v54 = vrot.slane %v705_v42, 1  ;;  %v810_v55 = vmul.f32 %v1718_v29, %v705_v42  ;;  %v722_v56 = vrot.slane %v666_v43, 7 }
  0xee   : > { %v753_v57 = vrot.slane %v666_v43, 1  ;;  %v811_v58 = vmul.f32 %v1718_v29, %v666_v43  ;;  %v870_v59 = vmul.f32 %v1720_v30, %v666_v43  ;;  %v796_v16 = vmul.f32 %v1723_v32, %v1753_v60 }
  0xef   : > { %v742_v61 = vsel %vm741_vm3, 0.0, %v721_v53  ;;  %v773_v62 = vsel %vm772_vm4, %v752_v54, 0.0  ;;  %v743_v63 = vsel %vm741_vm3, 0.0, %v722_v56  ;;  %v694_v12 = vpop.f32.mrb[4].mxu1  ;;  %v836_v17 = vmul.f32 %v1725_v33, %v1759_v0 }
  0xf0   : > { %v790_v1 = vmul.f32 %v1723_v32, %v742_v61  ;;  %v830_v3 = vmul.f32 %v1725_v33, %v773_v62  ;;  %v774_v4 = vsel %vm772_vm4, %v753_v57, 0.0  ;;  %v791_v5 = vmul.f32 %v1723_v32, %v743_v63  ;;  %v670_v6 = vpop.f32.mrb[4].mxu0  ;;  %v1504_v18 = vpop.f32.mrb[5].mxu1 }
  0xf1   : > { %v831_v7 = vmul.f32 %v1725_v33, %v774_v4  ;;  %v850_v8 = vmul.f32 %v1727_v37, %v743_v63  ;;  %v890_v9 = vmul.f32 %v1729_v38, %v774_v4  ;;  %v1769_v10 = vadd.f32 %v1713_v26, %v670_v6  ;;  %v1492_v11 = vpop.f32.mrb[5].mxu0  ;;  %v1781_v25 = vpop.f32.mrb[6].mxu1 }
  0xf2   : > { %v818_v13 = vadd.f32 %v810_v55, %v790_v1  ;;  %v819_v14 = vadd.f32 %v811_v58, %v791_v5  ;;  %v673_v15 = vpop.f32.mrb[6].mxu0  ;;  %v824_v34 = vadd.f32 %v816_v50, %v796_v16  ;;  %v1505_v35 = vpop.f32.mrb[7].mxu1  ;;  %v1791_v40 = vmul.f32 %v1727_v37, %v1753_v60 }
  0xf3   : > { %v723_v19 = vrot.slane %v1769_v10, 7  ;;  %v754_v21 = vrot.slane %v1769_v10, 1  ;;  %v812_v22 = vmul.f32 %v1718_v29, %v1769_v10  ;;  %v871_v23 = vmul.f32 %v1720_v30, %v1769_v10  ;;  %v1493_v24 = vpop.f32.mrb[7].mxu0 }
  0xf4   : > { %v838_v27 = vadd.f32 %v830_v3, %v818_v13  ;;  %v839_v28 = vadd.f32 %v831_v7, %v819_v14  ;;  %v1784_v31 = vadd.f32 %v1713_v26, %v673_v15  ;;  %v1794_v42 = vadd.f32 %v1713_v26, %v689_v45 }
  0xf5   : > { %v1787_v36 = vsel %vm741_vm3, 0.0, %v723_v19  ;;  %v695_v43 = vadd.f32 %v1713_v26, %v694_v12  ;;  %v844_v54 = vadd.f32 %v836_v17, %v824_v34 }
  0xf6   : > { %v858_v44 = vadd.f32 %v850_v8, %v838_v27  ;;  %v792_v48 = vmul.f32 %v1723_v32, %v1787_v36  ;;  %v851_v49 = vmul.f32 %v1727_v37, %v1787_v36  ;;  %v724_v50 = vrot.slane %v1784_v31, 7 }
  0xf7   : > { %v755_v52 = vrot.slane %v1784_v31, 1  ;;  %v813_v53 = vmul.f32 %v1718_v29, %v1784_v31  ;;  %v1807_v45 = vmul.f32 %v1720_v30, %v1784_v31  ;;  %v728_v1 = vrot.slane %v1794_v42, 7 }
  0xf8   : > { %v878_v55 = vadd.f32 %v870_v59, %v858_v44  ;;  %v1809_v56 = vadd.f32 %v812_v22, %v792_v48  ;;  %v859_v57 = vadd.f32 %v851_v49, %v839_v28  ;;  %v1812_v58 = vsel %vm741_vm3, 0.0, %v724_v50  ;;  %v678_v61 = vpop.f32.mrb[8].mxu0 }
  0xf9   : > { %v793_v62 = vmul.f32 %v1723_v32, %v1812_v58  ;;  %v1818_v63 = vmul.f32 %v1727_v37, %v1812_v58  ;;  %v759_v3 = vrot.slane %v1794_v42, 1  ;;  %v1496_v4 = vpop.f32.mrb[9].mxu0  ;;  %v817_v6 = vmul.f32 %v1718_v29, %v1794_v42 }
  0xfa   : > { %v1822_v59 = vadd.f32 %v890_v9, %v878_v55  ;;  %v1824_v5 = vadd.f32 %v871_v23, %v859_v57  ;;  %v876_v7 = vmul.f32 %v1720_v30, %v1794_v42  ;;  %v681_v8 = vpop.f32.mrb[10].mxu0  ;;  %v1833_v12 = vsel %vm741_vm3, 0.0, %v728_v1 }
  0xfb   : > { %v1830_v11 = vadd.f32 %v813_v53, %v793_v62  ;;  %v1836_v13 = vsel %vm772_vm4, %v759_v3, 0.0  ;;  %v1839_v9 = vadd.f32 %v1713_v26, %v678_v61  ;;  %v1497_v14 = vpop.f32.mrb[11].mxu0  ;;  %v797_v15 = vmul.f32 %v1723_v32, %v1833_v12 }
  0xfc   : > { %v856_v16 = vmul.f32 %v1727_v37, %v1833_v12  ;;  %v729_v17 = vrot.slane %v695_v43, 7  ;;  %v760_v18 = vrot.slane %v695_v43, 1  ;;  %v837_v49 = vmul.f32 %v1725_v33, %v1836_v13 }
  0xfd   : > { %v725_v19 = vrot.slane %v1839_v9, 7  ;;  %v756_v22 = vrot.slane %v1839_v9, 1  ;;  %v814_v23 = vmul.f32 %v1718_v29, %v1839_v9  ;;  %v1851_v24 = vmul.f32 %v1720_v30, %v1839_v9 }
  0xfe   : > { %v825_v27 = vadd.f32 %v817_v6, %v797_v15  ;;  %v864_v28 = vadd.f32 %v856_v16, %v844_v54  ;;  %v1855_v34 = vmul.f32 %v1734_v41, %v1839_v9  ;;  %v750_v35 = vsel %vm741_vm3, 0.0, %v729_v17 }
  0xff   : > { %v1859_v44 = vsel %vm741_vm3, 0.0, %v725_v19  ;;  %v781_v48 = vsel %vm772_vm4, %v760_v18, 0.0  ;;  %v857_v50 = vmul.f32 %v1727_v37, %v750_v35  ;;  %v877_v57 = vmul.f32 %v1720_v30, %v695_v43 }
 0x100   : > { %v884_v53 = vadd.f32 %v876_v7, %v864_v28  ;;  %v794_v54 = vmul.f32 %v1723_v32, %v1859_v44  ;;  %v853_v55 = vmul.f32 %v1727_v37, %v1859_v44  ;;  %v845_v61 = vadd.f32 %v837_v49, %v825_v27 }
 0x101   : > { %v896_v62 = vmul.f32 %v1729_v38, %v1836_v13  ;;  %v897_v1 = vmul.f32 %v1729_v38, %v781_v48  ;;  %v916_v3 = vmul.f32 %v1737_v46, %v750_v35  ;;  %v936_v6 = vmul.f32 %v1734_v41, %v695_v43 }
 0x102   : > { %v822_v4 = vadd.f32 %v814_v23, %v794_v54  ;;  %v1876_v7 = vmul.f32 %v1739_v47, %v781_v48  ;;  %v682_v14 = vadd.f32 %v1713_v26, %v681_v8  ;;  %v865_v15 = vadd.f32 %v857_v50, %v845_v61 }
 0x103   : > { %v904_v16 = vadd.f32 %v896_v62, %v884_v53  ;;  %v698_v17 = vadd.f32 %v1713_v26, %v1781_v25  ;;  %v775_v18 = vsel %vm772_vm4, %v754_v21, 0.0  ;;  %v776_v26 = vsel %vm772_vm4, %v755_v52, 0.0 }
 0x104   : > { %v726_v19 = vrot.slane %v682_v14, 7  ;;  %v757_v27 = vrot.slane %v682_v14, 1  ;;  %v815_v23 = vmul.f32 %v1718_v29, %v682_v14  ;;  %v1886_v43 = vmul.f32 %v1720_v30, %v682_v14 }
 0x105   : > { %v885_v28 = vadd.f32 %v877_v57, %v865_v15  ;;  %v924_v35 = vadd.f32 %v916_v3, %v904_v16  ;;  %v1889_v8 = vmul.f32 %v1734_v41, %v682_v14  ;;  %v710_v48 = vmul.f32 0.0, %v698_v17 }
 0x106   : > { %v747_v49 = vsel %vm741_vm3, 0.0, %v726_v19  ;;  %v832_v21 = vmul.f32 %v1725_v33, %v775_v18  ;;  %v891_v25 = vmul.f32 %v1729_v38, %v775_v18  ;;  %v833_v62 = vmul.f32 %v1725_v33, %v776_v26 }
 0x107   : > { %v1897_v29 = vadd.f32 %v936_v6, %v924_v35  ;;  %v795_v30 = vmul.f32 %v1723_v32, %v747_v49  ;;  %v854_v50 = vmul.f32 %v1727_v37, %v747_v49  ;;  %v730_v53 = vrot.slane %v710_v48, 7 }
 0x108   : > { %v761_v54 = vrot.slane %v710_v48, 1  ;;  %v905_v57 = vadd.f32 %v897_v1, %v885_v28  ;;  %v937_v61 = vmul.f32 %v1734_v41, %v710_v48  ;;  %v840_v14 = vadd.f32 %v832_v21, %v1809_v56 }
 0x109   : > { %v823_v3 = vadd.f32 %v815_v23, %v795_v30  ;;  %v751_v52 = vsel %vm741_vm3, 0.0, %v730_v53  ;;  %v892_v15 = vmul.f32 %v1729_v38, %v776_v26  ;;  %v899_v37 = vadd.f32 %v891_v25, %v1824_v5 }
 0x10a   : > { %v782_v6 = vsel %vm772_vm4, %v761_v54, 0.0  ;;  %v917_v32 = vmul.f32 %v1737_v46, %v751_v52  ;;  %v910_v1 = vmul.f32 %v1737_v46, %v1787_v36  ;;  %v911_v17 = vmul.f32 %v1737_v46, %v1812_v58 }
 0x10b   : > { %v957_v16 = vmul.f32 %v1739_v47, %v782_v6  ;;  %v930_v19 = vmul.f32 %v1734_v41, %v1769_v10  ;;  %v931_v56 = vmul.f32 %v1734_v41, %v1784_v31  ;;  %v950_v5 = vmul.f32 %v1739_v47, %v775_v18  ;;  %v1931_v18 = vld [vmem:[%s2123_s6] ss:$0 sm:$0xff] }
 0x10c   : > { %v925_v23 = vadd.f32 %v917_v32, %v905_v57  ;;  %v918_v28 = vadd.f32 %v910_v1, %v1822_v59  ;;  %v951_v35 = vmul.f32 %v1739_v47, %v776_v26  ;;  %v919_v36 = vadd.f32 %v911_v17, %v899_v37 }
 0x10d   : > { %v841_v48 = vadd.f32 %v833_v62, %v1830_v11  ;;  %v860_v21 = vadd.f32 %v1818_v63, %v840_v14  ;;  %v777_v10 = vsel %vm772_vm4, %v756_v22, 0.0  ;;  %v778_v31 = vsel %vm772_vm4, %v757_v27, 0.0 }
 0x10e   : > { %v945_v58 = vadd.f32 %v937_v61, %v925_v23  ;;  %v938_v25 = vadd.f32 %v930_v19, %v918_v28  ;;  %v834_v30 = vmul.f32 %v1725_v33, %v777_v10  ;;  %v939_v59 = vadd.f32 %v931_v56, %v919_v36 }
 0x10f   : > { %v861_v26 = vadd.f32 %v853_v55, %v841_v48  ;;  %v835_v11 = vmul.f32 %v1725_v33, %v778_v31  ;;  %v880_v63 = vadd.f32 %v1807_v45, %v860_v21  ;;  %v893_v54 = vmul.f32 %v1729_v38, %v777_v10 }
 0x110   : > { %v965_v9 = vadd.f32 %v957_v16, %v945_v58  ;;  %v958_v53 = vadd.f32 %v950_v5, %v938_v25  ;;  %v842_v22 = vadd.f32 %v834_v30, %v822_v4  ;;  %v959_v57 = vadd.f32 %v951_v35, %v939_v59 }
 0x111   : > { %v881_v27 = vadd.f32 %v1851_v24, %v861_v26  ;;  %v900_v61 = vadd.f32 %v892_v15, %v880_v63  ;;  %v912_v62 = vmul.f32 %v1737_v46, %v1859_v44  ;;  %v913_v55 = vmul.f32 %v1737_v46, %v747_v49 }
 0x112   : > { %v1940_v52 = vadd.f32 %v1931_v18, %v958_v53  ;;  %v952_v33 = vmul.f32 %v1739_v47, %v777_v10  ;;  %v953_v45 = vmul.f32 %v1739_v47, %v778_v31  ;;  %v1946_v4 = vadd.f32 %v1931_v18, %v959_v57 }
 0x113   : > { %v901_v14 = vadd.f32 %v893_v54, %v881_v27  ;;  %v920_v6 = vadd.f32 %v912_v62, %v900_v61  ;;  %v843_v32 = vadd.f32 %v835_v11, %v823_v3  ;;  %v862_v15 = vadd.f32 %v854_v50, %v842_v22 }
 0x114   : > { %v1134_v24 = vmul.f32 %v1940_v52, %v1940_v52  ;;  %v894_v44 = vmul.f32 %v1729_v38, %v778_v31  ;;  %v895_v37 = vmul.f32 %v1729_v38, %v1759_v0  ;;  %v1955_v49 = vpack.c.bf16 %v1946_v4, %v1940_v52 }
 0x115   : > { %v1135_v1 = vmul.f32 %v1946_v4, %v1946_v4  ;;  %v921_v16 = vadd.f32 %v913_v55, %v901_v14  ;;  %v940_v17 = vadd.f32 %v1855_v34, %v920_v6  ;;  %v863_v50 = vadd.f32 %v1791_v40, %v843_v32 }
 0x116   : > { %v1142_v3 = vsel %vm551_vm1, %v1134_v24, 0.0  ;;  %v1168_v19 = vsel %vm1167_vm5, %v1134_v24, 0.0  ;;  %v882_v56 = vadd.f32 %v1886_v43, %v862_v15  ;;  %1072 = vrot.lane.b32.xlu0 %v1955_v49, %s1576_s29  ;;  %v914_v43 = vmul.f32 %v1737_v46, %v1753_v60 }
 0x117   : > { %v1143_v38 = vsel %vm551_vm1, %v1135_v1, 0.0  ;;  %v1169_v23 = vsel %vm1167_vm5, %v1135_v1, 0.0  ;;  %v941_v28 = vadd.f32 %v1889_v8, %v921_v16  ;;  %v960_v5 = vadd.f32 %v952_v33, %v940_v17 }
 0x118   : > { %v1144_v34 = vadd.f32 %v1143_v38, %v1142_v3  ;;  %v1170_v35 = vadd.f32 %v1169_v23, %v1168_v19  ;;  %v883_v36 = vadd.f32 %v1747_v51, %v863_v50  ;;  %v902_v48 = vadd.f32 %v894_v44, %v882_v56 }
 0x119   : > { %v961_v21 = vadd.f32 %v953_v45, %v941_v28  ;;  %v1971_v40 = vadd.f32 %v1931_v18, %v960_v5  ;;  %v915_v58 = vmul.f32 %v1737_v46, %v1833_v12  ;;  %v934_v8 = vmul.f32 %v1734_v41, %v1732_v39 }
 0x11a   : > { %v903_v10 = vadd.f32 %v895_v37, %v883_v36  ;;  %v935_v25 = vmul.f32 %v1734_v41, %v1794_v42  ;;  %v922_v30 = vadd.f32 %v914_v43, %v902_v48  ;;  %v954_v60 = vmul.f32 %v1739_v47, %v1759_v0 }
 0x11b   : > { %v1982_v51 = vadd.f32 %v1931_v18, %v961_v21  ;;  %v1136_v31 = vmul.f32 %v1971_v40, %v1971_v40  ;;  %v955_v46 = vmul.f32 %v1739_v47, %v1836_v13  ;;  %v964_v39 = vadd.f32 %v1876_v7, %v1897_v29 }
 0x11c   : > { %v923_v59 = vadd.f32 %v915_v58, %v903_v10  ;;  %v1993_v12 = vadd.f32 %v1931_v18, %v965_v9  ;;  %v942_v47 = vadd.f32 %v934_v8, %v922_v30  ;;  %v1464_v38 = vpack.c.bf16 %v1940_v52, %v1940_v52 }
 0x11d   : > { %v1997_v41 = vpack.c.bf16 %v1982_v51, %v1971_v40  ;;  %v1137_v42 = vmul.f32 %v1982_v51, %v1982_v51  ;;  %v1145_v26 = vsel %vm551_vm1, %v1136_v31, 0.0  ;;  %v1171_v0 = vsel %vm1167_vm5, %v1136_v31, 0.0 }
 0x11e   : > { %v1146_v11 = vadd.f32 %v1145_v26, %v1144_v34  ;;  %v1172_v63 = vadd.f32 %v1171_v0, %v1170_v35  ;;  %v943_v13 = vadd.f32 %v935_v25, %v923_v59  ;;  %v2008_v9 = vadd.f32 %v1931_v18, %v964_v39 }
 0x11f   : > { %v1147_v7 = vsel %vm551_vm1, %v1137_v42, 0.0  ;;  %v1173_v29 = vsel %vm1167_vm5, %v1137_v42, 0.0  ;;  %1074 = vrot.lane.b32.xlu0 %v1997_v41, %s1576_s29  ;;  %v962_v53 = vadd.f32 %v954_v60, %v942_v47  ;;  %v1141_v37 = vmul.f32 %v1993_v12, %v1993_v12  ;;  %v1133_v60 = vld [vmem:[%s1694_s18] sm:$0x1] }
 0x120   : > { %v963_v22 = vadd.f32 %v955_v46, %v943_v13  ;;  %v1148_v54 = vadd.f32 %v1147_v7, %v1146_v11  ;;  %v1174_v57 = vadd.f32 %v1173_v29, %v1172_v63  ;;  %v2012_v27 = vpack.c.bf16 %v1993_v12, %v2008_v9 }
 0x121   : > { %v977_v61 = vadd.f32 %v1931_v18, %v962_v53  ;;  %v1140_v14 = vmul.f32 %v2008_v9, %v2008_v9  ;;  %v1155_v56 = vsel %vm551_vm1, %v1141_v37, 0.0  ;;  %v1181_v23 = vsel %vm1167_vm5, %v1141_v37, 0.0 }
 0x122   : > { %v978_v62 = vadd.f32 %v1931_v18, %v963_v22  ;;  %v1465_v36 = vpack.c.bf16 %v1946_v4, %v1946_v4  ;;  %v1466_v52 = vpack.c.bf16 %v1971_v40, %v1971_v40  ;;  %v1467_v25 = vpack.c.bf16 %v1982_v51, %v1982_v51 }
 0x123   : > { %v1138_v33 = vmul.f32 %v977_v61, %v977_v61  ;;  %v1153_v17 = vsel %vm551_vm1, %v1140_v14, 0.0  ;;  %v1179_v3 = vsel %vm1167_vm5, %v1140_v14, 0.0  ;;  %v1578_v30 = vmov 1966171168   ;;  %v1047_v14 = vld [vmem:[%s2067_s22 + $0x8] sm:$0xff] }
 0x124   : > { %v2016_v55 = vpack.c.bf16 %v978_v62, %v977_v61  ;;  %v1139_v45 = vmul.f32 %v978_v62, %v978_v62  ;;  %v1191_v4 = vunpack.c.l.s4 %v1578_v30  ;;  %v1468_v46 = vpack.c.bf16 %v977_v61, %v977_v61 }
 0x125   : > { %v1149_v6 = vsel %vm551_vm1, %v1138_v33, 0.0  ;;  %v1175_v24 = vsel %vm1167_vm5, %v1138_v33, 0.0  ;;  %v1469_v42 = vpack.c.bf16 %v978_v62, %v978_v62  ;;  %v1471_v11 = vpack.c.bf16 %v1993_v12, %v1993_v12  ;;  %v1046_v33 = vld [vmem:[%s2067_s22] sm:$0xff] }
 0x126   : > { %v1151_v32 = vsel %vm551_vm1, %v1139_v45, 0.0  ;;  %v1177_v15 = vsel %vm1167_vm5, %v1139_v45, 0.0  ;;  %1076 = vrot.lane.b32.xlu1 %v2016_v55, %s1576_s29  ;;  %v1150_v44 = vadd.f32 %v1149_v6, %v1148_v54  ;;  %v1176_v18 = vadd.f32 %v1175_v24, %v1174_v57 }
 0x127   : > { %v1192_v39 = vunpack.c.0.s8 %v1191_v4 }
 0x128   : > { %v1152_v1 = vadd.f32 %v1151_v32, %v1150_v44  ;;  %v1178_v16 = vadd.f32 %v1177_v15, %v1176_v18 }
 0x129   : > { %v1195_v0 = vsub.s32 %v1192_v39, %v1699_v20  ;;  %v1470_v20 = vpack.c.bf16 %v2008_v9, %v2008_v9 }
 0x12a   : > { %1078 = vrot.lane.b32.xlu1 %v2012_v27, %s1576_s29  ;;  %v1154_v19 = vadd.f32 %v1153_v17, %v1152_v1  ;;  %v1180_v50 = vadd.f32 %v1179_v3, %v1178_v16 }
 0x12c   : > { %v1156_v28 = vadd.f32 %v1155_v56, %v1154_v19  ;;  %v1182_v5 = vadd.f32 %v1181_v23, %v1180_v50 }
 0x12e   : > { %1013 = vrot.lane.b32.xlu1 %v1464_v38, %s1577_s30  ;;  %v1157_v34 = vrot.slane %v1156_v28, 4  ;;  %v1183_v35 = vrot.slane %v1182_v5, 4 }
 0x130   : > { %v1158_v48 = vadd.f32 %v1157_v34, %v1156_v28  ;;  %v1184_v21 = vadd.f32 %v1183_v35, %v1182_v5 }
 0x132   : > { %1015 = vrot.lane.b32.xlu1 %v1465_v36, %s1577_s30  ;;  %v1159_v43 = vrot.slane %v1158_v48, 2  ;;  %v1185_v10 = vrot.slane %v1184_v21, 2 }
 0x134   : > { %v1160_v58 = vadd.f32 %v1159_v43, %v1158_v48  ;;  %v1186_v31 = vadd.f32 %v1185_v10, %v1184_v21 }
 0x136   : > { %1017 = vrot.lane.b32.xlu1 %v1466_v52, %s1577_s30  ;;  %v1161_v8 = vrot.slane %v1160_v58, 1  ;;  %v1187_v51 = vrot.slane %v1186_v31, 1 }
 0x138   : > { %v1162_v40 = vadd.f32 %v1161_v8, %v1160_v58  ;;  %v1188_v26 = vadd.f32 %v1187_v51, %v1186_v31 }
 0x13a   : > { %1019 = vrot.lane.b32.xlu1 %v1467_v25, %s1577_s30  ;;  %v1163_v59 = vadd.f32 %v1162_v40, %v1133_v60 }
 0x13c   : > { %1165 = vst.msk [vmem:[%s1694_s18] sm:$0x1] %vm554_vm2, %v1163_v59  ;;  %s1457_s18 = sshll.u32 %s2133_s13, 5 }
 0x13d   : > { %1052 = vxpose.xlu0.c.b16.start [1/4] (short) (narrow) %v1955_v49, 16  ;;  %v1196_v49 = vrot.slane %v1188_v26, %v1195_v0  ;;  %s533_s25 = scalar_lea.vmem %s2124_s7, %s1457_s18 }
 0x13e   : > { %1021 = vrot.lane.b32.xlu1 %v1468_v46, %s1577_s30 }
 0x141   : > { %1053 = vxpose.xlu0.c.b16.cont [2/4] (short) (narrow) %v1997_v41, 16  ;;  %v1203_v41 = vrot.slane %v1196_v49, %v1195_v0 }
 0x142   : > { %1023 = vrot.lane.b32.xlu1 %v1469_v42, %s1577_s30 }
 0x145   : > { %1054 = vxpose.xlu0.c.b16.cont [3/4] (short) (narrow) %v2016_v55, 16 }
 0x146   : > { %1025 = vrot.lane.b32.xlu1 %v1470_v20, %s1577_s30 }
 0x149   : > { %1055 = vxpose.xlu0.c.b16.end [4/4] (short) (narrow) %v2012_v27, 16  ;;  %v1166_v27 = vld [vmem:[%s2050_s17] sm:$0x1] }
 0x14a   : > { %1204 = vrot.lane.b32.xlu1 %v1203_v41, %s1576_s29 }
 0x14e   : > { %1027 = vrot.lane.b32.xlu1 %v1471_v11, %s1577_s30 }
 0x188   : > { %v1073_v63 = vpop.permute.xlu0 %1072 }
 0x189   : > { %1507 = vmatpush3.bf16.msra.mxu1 %v1073_v63 }
 0x18a   : > { %1508 = vmatprep.subr.bf16.mxu1 %v1574_v2 }
 0x191   : > { %v1075_v47 = vpop.permute.xlu0 %1074 }
 0x192   : > { %1509 = vmatpush3.bf16.msra.mxu1 %v1075_v47 }
 0x193   : > { %1510 = vmatprep.subr.bf16.mxu1 %v1574_v2 }
 0x198   : > { %v1077_v13 = vpop.permute.xlu1 %1076 }
 0x199   : > { %1511 = vmatpush3.bf16.msra.mxu1 %v1077_v13 }
 0x19a   : > { %1512 = vmatprep.subr.bf16.mxu1 %v1574_v2 }
 0x19c   : > { %v1079_v7 = vpop.permute.xlu1 %1078 }
 0x19d   : > { %1513 = vmatpush3.bf16.msra.mxu1 %v1079_v7 }
 0x1a0   : > { %v1014_v12 = vpop.permute.xlu1 %1013 }
 0x1a1   : > { %1038 = vst.msk [vmem:[%s533_s25] sm:$0xf] %vm1037_vm6, %v1014_v12 }
 0x1a3   : > { %v1060_v29 = vpop.trf.xlu0 }
 0x1a4   : > { %v1016_v9 = vpop.permute.xlu1 %1015  ;;  %1515 = vmatmul.mubr.msk.bf16.vlgmr.msra.gmra.mrb[8].mxu1 %vm1084_vm7, %v1060_v29 }
 0x1a5   : > { %1039 = vst.msk [vmem:[%s533_s25 + $0x4] sm:$0xf] %vm1037_vm6, %v1016_v9 }
 0x1a8   : > { %v1018_v2 = vpop.permute.xlu1 %1017 }
 0x1a9   : > { %1040 = vst.msk [vmem:[%s533_s25 + $0x8] sm:$0xf] %vm1037_vm6, %v1018_v2 }
 0x1ac   : > { %v1020_v53 = vpop.permute.xlu1 %1019 }
 0x1ad   : > { %1041 = vst.msk [vmem:[%s533_s25 + $0xc] sm:$0xf] %vm1037_vm6, %v1020_v53 }
 0x1b0   : > { %v1022_v22 = vpop.permute.xlu1 %1021 }
 0x1b1   : > { %1042 = vst.msk [vmem:[%s533_s25 + $0x10] sm:$0xf] %vm1037_vm6, %v1022_v22 }
 0x1b4   : > { %v1024_v54 = vpop.permute.xlu1 %1023 }
 0x1b5   : > { %1043 = vst.msk [vmem:[%s533_s25 + $0x14] sm:$0xf] %vm1037_vm6, %v1024_v54 }
 0x1b8   : > { %v1026_v57 = vpop.permute.xlu1 %1025 }
 0x1b9   : > { %1044 = vst.msk [vmem:[%s533_s25 + $0x18] sm:$0xf] %vm1037_vm6, %v1026_v57 }
 0x1bc   : > { %v1205_v61 = vpop.permute.xlu1 %1204 }
 0x1bd   : > { %v1207_v62 = vadd.f32 %v1205_v61, %v1166_v27 }
 0x1bf   : > { %1208 = vst.msk [vmem:[%s2050_s17] sm:$0x1] %vm554_vm2, %v1207_v62 }
 0x1c0   : > { %v1028_v55 = vpop.permute.xlu1 %1027 }
 0x1c1   : > { %1045 = vst.msk [vmem:[%s533_s25 + $0x1c] sm:$0xf] %vm1037_vm6, %v1028_v55 }
 0x277   : > { %v1122_v45 = vpop.f32.mrb[8].mxu1 }
 0x278   : > { %v1129_v6 = vadd.f32 %v1122_v45, %v1046_v33  ;;  %v1516_v32 = vpop.f32.mrb[9].mxu1 }
 0x279   : > { %v1125_v24 = vpop.f32.mrb[10].mxu1 }
 0x27a   : > { %1131 = vst.msk [vmem:[%s2067_s22] sm:$0xff] %vm551_vm1, %v1129_v6  ;;  %v1130_v15 = vadd.f32 %v1125_v24, %v1047_v14  ;;  %v1517_v44 = vpop.f32.mrb[11].mxu1 }
 0x27c   : > { %1132 = vst.msk [vmem:[%s2067_s22 + $0x8] sm:$0xff] %vm551_vm1, %v1130_v15 }
 0x27d PF: > { %s21_s15 = sadd.s32 1, %s1572_s15   ;;  %s2128_s13 = smov %s1568_s14 }
 0x27e   : > { %p18_p5 = scmp.ge.s32.totalorder %s21_s15, 4   ;;  %s2129_s14 = smov %s2131_s16 }
 0x280   :  { %20 = sbr.rel (!%p18_p5) target bundleno = 2 (0x2), region = 124 }

</bundles_post_ra>
